<compile_context>
chip_gen: v7x
topology: tpu7x:2x2x1
jax: 0.10.0
libtpu: 0.0.40
codegen_flags: <defaults>
</compile_context>

<pallas_src>
import jax
import jax.numpy as jnp
from jax.experimental import pallas as pl
from jax.experimental.pallas import tpu as pltpu


def make_lstm_kernel(Bp, T, I, H, O, L):
    """Builds the Pallas kernel body for fixed static shapes / layer count."""

    def kernel(*refs):
        # refs: gx0(T,Bp,4H), h0(L,Bp,H), c0(L,Bp,H), whh0_t(H,4H),
        #       [wcat_l(2H,4H), bias_l(1,4H)] for l=1..L-1,
        #       wd(H,O), bd(1,O),
        #       out(T*Bp,O), h_out(L,Bp,H), c_out(L,Bp,H)
        idx = 0
        gx0_ref = refs[idx]; idx += 1
        h0_ref = refs[idx]; idx += 1
        c0_ref = refs[idx]; idx += 1
        whh0_ref = refs[idx]; idx += 1
        upper = []
        for _ in range(L - 1):
            upper.append((refs[idx], refs[idx + 1])); idx += 2
        wd_ref = refs[idx]; bd_ref = refs[idx + 1]; idx += 2
        out_ref, hout_ref, cout_ref = refs[idx:idx + 3]

        def cell(g, c_prev):
            # One full-width sigmoid + one full-width tanh over the (Bp,4H) vreg.
            s = jax.nn.sigmoid(g)
            th = jnp.tanh(g)
            i_g = s[:, 0 * H:1 * H]
            f_g = s[:, 1 * H:2 * H]
            g_g = th[:, 2 * H:3 * H]
            o_g = s[:, 3 * H:4 * H]
            c_new = f_g * c_prev + i_g * g_g
            h_new = o_g * jnp.tanh(c_new)
            return h_new, c_new

        whh0_t = whh0_ref[...]          # (H, 4H), pre-transposed host-side
        wd = wd_ref[...]                # (H, O), collapsed dense1*dense2*dense3
        bd = bd_ref[...]                # (1, O)

        # ---- Layer 0: recurrent matmul only (input projection precomputed). ----
        h = h0_ref[0]
        c = c0_ref[0]
        below = []                      # per-timestep outputs of the layer below
        for t in range(T):              # fully unrolled (static T)
            g = gx0_ref[t] + jnp.dot(h, whh0_t, preferred_element_type=jnp.float32)
            h, c = cell(g, c)
            below.append(h)
        hout_ref[0] = h
        cout_ref[0] = c

        # ---- Layers 1..L-1: fused input+recurrent matmul (wavefront deps). ----
        # TODO(synk): nn.LSTM inter-layer dropout(p=0.5) omitted (eval-mode forward).
        for l in range(1, L):
            wcat = upper[l - 1][0][...]   # (2H, 4H) = [Wih_l.T ; Whh_l.T]
            bias = upper[l - 1][1][...]   # (1, 4H)  = bih_l + bhh_l
            h = h0_ref[l]
            c = c0_ref[l]
            outs = []
            for t in range(T):
                xin = jnp.concatenate([below[t], h], axis=1)        # (Bp, 2H)
                g = jnp.dot(xin, wcat, preferred_element_type=jnp.float32) + bias
                h, c = cell(g, c)
                outs.append(h)
            hout_ref[l] = h
            cout_ref[l] = c
            below = outs

        # ---- Epilogue: per-timestep ReLU + collapsed dense, hidden under the
        # recurrence's idle MXU slots; lane-dense 2-D (T*Bp, O) output. ----
        for t in range(T):
            y = jnp.maximum(below[t], 0.0)
            out_t = jnp.dot(y, wd, preferred_element_type=jnp.float32) + bd
            out_ref[t * Bp:(t + 1) * Bp, :] = out_t

    return kernel


def lstm_forward(x, hidden_in, mem_in, params, output_size):
    """Batch-first wrapper matching LSTM.forward(x, hidden_in1, mem_in1)."""
    B, T, I = x.shape
    L, _, H = hidden_in.shape
    O = output_size

    # Pad batch up to a full 8-sublane tile (padded rows zero, sliced away below).
    Bp = max(8, ((B + 7) // 8) * 8)
    pad = Bp - B

    # Layer-0 input projection as a plain XLA GEMM outside the serial region.
    bias0 = params["bih0"] + params["bhh0"]                          # (1, 4H)
    gx0 = jnp.einsum("bti,gi->btg", x, params["wih0"]) + bias0       # (B, T, 4H)
    gx0_tm = jnp.transpose(gx0, (1, 0, 2))                           # (T, B, 4H)
    gx0_tm = jnp.pad(gx0_tm, ((0, 0), (0, pad), (0, 0)))

    h0p = jnp.pad(hidden_in, ((0, 0), (0, pad), (0, 0)))
    c0p = jnp.pad(mem_in, ((0, 0), (0, pad), (0, 0)))

    inputs = [gx0_tm, h0p, c0p, params["whh0"].T]
    for l in range(1, L):
        wcat = jnp.concatenate([params[f"wih{l}"].T, params[f"whh{l}"].T], axis=0)
        inputs += [wcat, params[f"bih{l}"] + params[f"bhh{l}"]]

    # Collapse dense1 -> dense2 -> dense3 (no nonlinearity between them).
    w1t, w2t, w3t = params["w1"].T, params["w2"].T, params["w3"].T
    wd = w1t @ w2t @ w3t                                             # (H, O)
    bd = (params["b1"] @ w2t + params["b2"]) @ w3t + params["b3"]    # (1, O)
    inputs += [wd, bd]

    vspec = pl.BlockSpec(memory_space=pltpu.MemorySpace.VMEM)
    out2d, h_out, c_out = pl.pallas_call(
        make_lstm_kernel(Bp, T, I, H, O, L),
        out_shape=(jax.ShapeDtypeStruct((T * Bp, O), jnp.float32),
                   jax.ShapeDtypeStruct((L, Bp, H), jnp.float32),
                   jax.ShapeDtypeStruct((L, Bp, H), jnp.float32)),
        in_specs=[vspec] * len(inputs),
        out_specs=(vspec, vspec, vspec),
    )(*inputs)

    out = jnp.transpose(out2d.reshape(T, Bp, O), (1, 0, 2))[:B]
    return out, h_out[:, :B], c_out[:, :B]


def lstm_reference(x, hidden_in, mem_in, params, output_size):
    """Pure-JAX reference (same math as torch.nn.LSTM + Linear chain, eval mode)."""
    B, T, I = x.shape
    L, _, H = hidden_in.shape
    layer_in = x
    h_outs, c_outs = [], []
    for l in range(L):
        wih, whh = params[f"wih{l}"], params[f"whh{l}"]
        bias = params[f"bih{l}"] + params[f"bhh{l}"]
        h, c = hidden_in[l], mem_in[l]
        outs = []
        for t in range(T):
            g = layer_in[:, t, :] @ wih.T + h @ whh.T + bias[0]
            i_g = jax.nn.sigmoid(g[:, :H])
            f_g = jax.nn.sigmoid(g[:, H:2 * H])
            g_g = jnp.tanh(g[:, 2 * H:3 * H])
            o_g = jax.nn.sigmoid(g[:, 3 * H:])
            c = f_g * c + i_g * g_g
            h = o_g * jnp.tanh(c)
            outs.append(h)
        layer_in = jnp.stack(outs, axis=1)
        h_outs.append(h)
        c_outs.append(c)
    y = jnp.maximum(layer_in, 0.0)
    y = y @ params["w1"].T + params["b1"][0]
    y = y @ params["w2"].T + params["b2"][0]
    y = y @ params["w3"].T + params["b3"][0]
    return y, jnp.stack(h_outs, 0), jnp.stack(c_outs, 0)


def init_params(key, input_size, output_size, hidden_size, num_layers):
    H = hidden_size
    k_lstm = 1.0 / jnp.sqrt(H)
    params = {}
    keys = jax.random.split(key, 4 * num_layers + 6)
    ki = 0
    for l in range(num_layers):
        in_l = input_size if l == 0 else H
        params[f"wih{l}"] = jax.random.uniform(keys[ki], (4 * H, in_l), jnp.float32, -k_lstm, k_lstm); ki += 1
        params[f"whh{l}"] = jax.random.uniform(keys[ki], (4 * H, H), jnp.float32, -k_lstm, k_lstm); ki += 1
        params[f"bih{l}"] = jax.random.uniform(keys[ki], (1, 4 * H), jnp.float32, -k_lstm, k_lstm); ki += 1
        params[f"bhh{l}"] = jax.random.uniform(keys[ki], (1, 4 * H), jnp.float32, -k_lstm, k_lstm); ki += 1
    k_lin = 1.0 / jnp.sqrt(H)
    params["w1"] = jax.random.uniform(keys[ki], (H, H), jnp.float32, -k_lin, k_lin); ki += 1
    params["b1"] = jax.random.uniform(keys[ki], (1, H), jnp.float32, -k_lin, k_lin); ki += 1
    params["w2"] = jax.random.uniform(keys[ki], (H, H), jnp.float32, -k_lin, k_lin); ki += 1
    params["b2"] = jax.random.uniform(keys[ki], (1, H), jnp.float32, -k_lin, k_lin); ki += 1
    params["w3"] = jax.random.uniform(keys[ki], (output_size, H), jnp.float32, -k_lin, k_lin); ki += 1
    params["b3"] = jax.random.uniform(keys[ki], (1, output_size), jnp.float32, -k_lin, k_lin); ki += 1
    return params


if __name__ == "__main__":
    input_size, output_size, hidden_size, num_layers = 4, 4, 32, 2
    B, T = 2, 8

    key = jax.random.PRNGKey(0)
    kx, kh, kc, kp = jax.random.split(key, 4)
    x = jax.random.normal(kx, (B, T, input_size), jnp.float32)
    hidden_in = jax.random.normal(kh, (num_layers, B, hidden_size), jnp.float32)
    mem_in = jax.random.normal(kc, (num_layers, B, hidden_size), jnp.float32)
    params = init_params(kp, input_size, output_size, hidden_size, num_layers)

    out, h_out, c_out = lstm_forward(x, hidden_in, mem_in, params, output_size)
    jax.block_until_ready((out, h_out, c_out))

    ref_out, ref_h, ref_c = lstm_reference(x, hidden_in, mem_in, params, output_size)
    assert out.shape == (B, T, output_size)
    assert h_out.shape == (num_layers, B, hidden_size)
    assert c_out.shape == (num_layers, B, hidden_size)
    assert jnp.allclose(out, ref_out, rtol=1e-4, atol=1e-4)
    assert jnp.allclose(h_out, ref_h, rtol=1e-4, atol=1e-4)
    assert jnp.allclose(c_out, ref_c, rtol=1e-4, atol=1e-4)

    print("KERNEL_OK")
</pallas_src>

<mosaic_0001>
module attributes {stable_mosaic.version = 11 : i64} {
  func.func @kernel(%arg0: memref<8x8x128xf32, #tpu.memory_space<vmem>>, %arg1: memref<2x8x32xf32, #tpu.memory_space<vmem>>, %arg2: memref<2x8x32xf32, #tpu.memory_space<vmem>>, %arg3: memref<32x128xf32, #tpu.memory_space<vmem>>, %arg4: memref<64x128xf32, #tpu.memory_space<vmem>>, %arg5: memref<1x128xf32, #tpu.memory_space<vmem>>, %arg6: memref<32x4xf32, #tpu.memory_space<vmem>>, %arg7: memref<1x4xf32, #tpu.memory_space<vmem>>, %arg8: memref<64x4xf32, #tpu.memory_space<vmem>>, %arg9: memref<2x8x32xf32, #tpu.memory_space<vmem>>, %arg10: memref<2x8x32xf32, #tpu.memory_space<vmem>>) attributes {dimension_semantics = [], scalar_prefetch = 0 : i64, scratch_operands = 0 : i64, tpu.core_type = #tpu.core_type<tc>} {
    %c0 = arith.constant 0 : index
    %c0_0 = arith.constant 0 : index
    %0 = vector.load %arg3[%c0, %c0_0] : memref<32x128xf32, #tpu.memory_space<vmem>>, vector<32x128xf32>
    %c0_1 = arith.constant 0 : index
    %c0_2 = arith.constant 0 : index
    %1 = vector.load %arg6[%c0_1, %c0_2] : memref<32x4xf32, #tpu.memory_space<vmem>>, vector<32x4xf32>
    %c0_3 = arith.constant 0 : index
    %c0_4 = arith.constant 0 : index
    %2 = vector.load %arg7[%c0_3, %c0_4] : memref<1x4xf32, #tpu.memory_space<vmem>>, vector<1x4xf32>
    %c0_5 = arith.constant 0 : index
    %c0_6 = arith.constant 0 : index
    %c0_7 = arith.constant 0 : index
    %3 = vector.load %arg1[%c0_5, %c0_6, %c0_7] : memref<2x8x32xf32, #tpu.memory_space<vmem>>, vector<1x8x32xf32>
    %4 = vector.shape_cast %3 : vector<1x8x32xf32> to vector<8x32xf32>
    %c0_8 = arith.constant 0 : index
    %c0_9 = arith.constant 0 : index
    %c0_10 = arith.constant 0 : index
    %5 = vector.load %arg2[%c0_8, %c0_9, %c0_10] : memref<2x8x32xf32, #tpu.memory_space<vmem>>, vector<1x8x32xf32>
    %6 = vector.shape_cast %5 : vector<1x8x32xf32> to vector<8x32xf32>
    %c0_11 = arith.constant 0 : index
    %c0_12 = arith.constant 0 : index
    %c0_13 = arith.constant 0 : index
    %7 = vector.load %arg0[%c0_11, %c0_12, %c0_13] : memref<8x8x128xf32, #tpu.memory_space<vmem>>, vector<1x8x128xf32>
    %8 = vector.shape_cast %7 : vector<1x8x128xf32> to vector<8x128xf32>
    %cst = arith.constant dense<0.000000e+00> : vector<8x128xf32>
    %9 = tpu.matmul %4, %0, %cst {dimension_numbers = #tpu.dot_dimension_numbers<[1], [0], [0], [1], [0, 0, 1, 1], [], []>} : vector<8x32xf32>, vector<32x128xf32>, vector<8x128xf32> -> vector<8x128xf32>
    %10 = arith.addf %8, %9 : vector<8x128xf32>
    %11 = arith.negf %10 : vector<8x128xf32>
    %12 = math.exp %11 : vector<8x128xf32>
    %cst_14 = arith.constant 1.000000e+00 : f32
    %13 = vector.broadcast %cst_14 : f32 to vector<8x128xf32>
    %14 = arith.addf %13, %12 : vector<8x128xf32>
    %15 = arith.divf %13, %14 : vector<8x128xf32>
    %16 = math.tanh %10 : vector<8x128xf32>
    %17 = vector.extract_strided_slice %15 {offsets = [0, 0], sizes = [8, 32], strides = [1, 1]} : vector<8x128xf32> to vector<8x32xf32>
    %18 = vector.extract_strided_slice %15 {offsets = [0, 32], sizes = [8, 32], strides = [1, 1]} : vector<8x128xf32> to vector<8x32xf32>
    %19 = vector.extract_strided_slice %16 {offsets = [0, 64], sizes = [8, 32], strides = [1, 1]} : vector<8x128xf32> to vector<8x32xf32>
    %20 = vector.extract_strided_slice %15 {offsets = [0, 96], sizes = [8, 32], strides = [1, 1]} : vector<8x128xf32> to vector<8x32xf32>
    %21 = arith.mulf %18, %6 : vector<8x32xf32>
    %22 = arith.mulf %17, %19 : vector<8x32xf32>
    %23 = arith.addf %21, %22 : vector<8x32xf32>
    %24 = math.tanh %23 : vector<8x32xf32>
    %25 = arith.mulf %20, %24 : vector<8x32xf32>
    %c1 = arith.constant 1 : index
    %c0_15 = arith.constant 0 : index
    %c0_16 = arith.constant 0 : index
    %26 = vector.load %arg0[%c1, %c0_15, %c0_16] : memref<8x8x128xf32, #tpu.memory_space<vmem>>, vector<1x8x128xf32>
    %27 = vector.shape_cast %26 : vector<1x8x128xf32> to vector<8x128xf32>
    %cst_17 = arith.constant dense<0.000000e+00> : vector<8x128xf32>
    %28 = tpu.matmul %25, %0, %cst_17 {dimension_numbers = #tpu.dot_dimension_numbers<[1], [0], [0], [1], [0, 0, 1, 1], [], []>} : vector<8x32xf32>, vector<32x128xf32>, vector<8x128xf32> -> vector<8x128xf32>
    %29 = arith.addf %27, %28 : vector<8x128xf32>
    %30 = arith.negf %29 : vector<8x128xf32>
    %31 = math.exp %30 : vector<8x128xf32>
    %cst_18 = arith.constant 1.000000e+00 : f32
    %32 = vector.broadcast %cst_18 : f32 to vector<8x128xf32>
    %33 = arith.addf %32, %31 : vector<8x128xf32>
    %34 = arith.divf %32, %33 : vector<8x128xf32>
    %35 = math.tanh %29 : vector<8x128xf32>
    %36 = vector.extract_strided_slice %34 {offsets = [0, 0], sizes = [8, 32], strides = [1, 1]} : vector<8x128xf32> to vector<8x32xf32>
    %37 = vector.extract_strided_slice %34 {offsets = [0, 32], sizes = [8, 32], strides = [1, 1]} : vector<8x128xf32> to vector<8x32xf32>
    %38 = vector.extract_strided_slice %35 {offsets = [0, 64], sizes = [8, 32], strides = [1, 1]} : vector<8x128xf32> to vector<8x32xf32>
    %39 = vector.extract_strided_slice %34 {offsets = [0, 96], sizes = [8, 32], strides = [1, 1]} : vector<8x128xf32> to vector<8x32xf32>
    %40 = arith.mulf %37, %23 : vector<8x32xf32>
    %41 = arith.mulf %36, %38 : vector<8x32xf32>
    %42 = arith.addf %40, %41 : vector<8x32xf32>
    %43 = math.tanh %42 : vector<8x32xf32>
    %44 = arith.mulf %39, %43 : vector<8x32xf32>
    %c2 = arith.constant 2 : index
    %c0_19 = arith.constant 0 : index
    %c0_20 = arith.constant 0 : index
    %45 = vector.load %arg0[%c2, %c0_19, %c0_20] : memref<8x8x128xf32, #tpu.memory_space<vmem>>, vector<1x8x128xf32>
    %46 = vector.shape_cast %45 : vector<1x8x128xf32> to vector<8x128xf32>
    %cst_21 = arith.constant dense<0.000000e+00> : vector<8x128xf32>
    %47 = tpu.matmul %44, %0, %cst_21 {dimension_numbers = #tpu.dot_dimension_numbers<[1], [0], [0], [1], [0, 0, 1, 1], [], []>} : vector<8x32xf32>, vector<32x128xf32>, vector<8x128xf32> -> vector<8x128xf32>
    %48 = arith.addf %46, %47 : vector<8x128xf32>
    %49 = arith.negf %48 : vector<8x128xf32>
    %50 = math.exp %49 : vector<8x128xf32>
    %cst_22 = arith.constant 1.000000e+00 : f32
    %51 = vector.broadcast %cst_22 : f32 to vector<8x128xf32>
    %52 = arith.addf %51, %50 : vector<8x128xf32>
    %53 = arith.divf %51, %52 : vector<8x128xf32>
    %54 = math.tanh %48 : vector<8x128xf32>
    %55 = vector.extract_strided_slice %53 {offsets = [0, 0], sizes = [8, 32], strides = [1, 1]} : vector<8x128xf32> to vector<8x32xf32>
    %56 = vector.extract_strided_slice %53 {offsets = [0, 32], sizes = [8, 32], strides = [1, 1]} : vector<8x128xf32> to vector<8x32xf32>
    %57 = vector.extract_strided_slice %54 {offsets = [0, 64], sizes = [8, 32], strides = [1, 1]} : vector<8x128xf32> to vector<8x32xf32>
    %58 = vector.extract_strided_slice %53 {offsets = [0, 96], sizes = [8, 32], strides = [1, 1]} : vector<8x128xf32> to vector<8x32xf32>
    %59 = arith.mulf %56, %42 : vector<8x32xf32>
    %60 = arith.mulf %55, %57 : vector<8x32xf32>
    %61 = arith.addf %59, %60 : vector<8x32xf32>
    %62 = math.tanh %61 : vector<8x32xf32>
    %63 = arith.mulf %58, %62 : vector<8x32xf32>
    %c3 = arith.constant 3 : index
    %c0_23 = arith.constant 0 : index
    %c0_24 = arith.constant 0 : index
    %64 = vector.load %arg0[%c3, %c0_23, %c0_24] : memref<8x8x128xf32, #tpu.memory_space<vmem>>, vector<1x8x128xf32>
    %65 = vector.shape_cast %64 : vector<1x8x128xf32> to vector<8x128xf32>
    %cst_25 = arith.constant dense<0.000000e+00> : vector<8x128xf32>
    %66 = tpu.matmul %63, %0, %cst_25 {dimension_numbers = #tpu.dot_dimension_numbers<[1], [0], [0], [1], [0, 0, 1, 1], [], []>} : vector<8x32xf32>, vector<32x128xf32>, vector<8x128xf32> -> vector<8x128xf32>
    %67 = arith.addf %65, %66 : vector<8x128xf32>
    %68 = arith.negf %67 : vector<8x128xf32>
    %69 = math.exp %68 : vector<8x128xf32>
    %cst_26 = arith.constant 1.000000e+00 : f32
    %70 = vector.broadcast %cst_26 : f32 to vector<8x128xf32>
    %71 = arith.addf %70, %69 : vector<8x128xf32>
    %72 = arith.divf %70, %71 : vector<8x128xf32>
    %73 = math.tanh %67 : vector<8x128xf32>
    %74 = vector.extract_strided_slice %72 {offsets = [0, 0], sizes = [8, 32], strides = [1, 1]} : vector<8x128xf32> to vector<8x32xf32>
    %75 = vector.extract_strided_slice %72 {offsets = [0, 32], sizes = [8, 32], strides = [1, 1]} : vector<8x128xf32> to vector<8x32xf32>
    %76 = vector.extract_strided_slice %73 {offsets = [0, 64], sizes = [8, 32], strides = [1, 1]} : vector<8x128xf32> to vector<8x32xf32>
    %77 = vector.extract_strided_slice %72 {offsets = [0, 96], sizes = [8, 32], strides = [1, 1]} : vector<8x128xf32> to vector<8x32xf32>
    %78 = arith.mulf %75, %61 : vector<8x32xf32>
    %79 = arith.mulf %74, %76 : vector<8x32xf32>
    %80 = arith.addf %78, %79 : vector<8x32xf32>
    %81 = math.tanh %80 : vector<8x32xf32>
    %82 = arith.mulf %77, %81 : vector<8x32xf32>
    %c4 = arith.constant 4 : index
    %c0_27 = arith.constant 0 : index
    %c0_28 = arith.constant 0 : index
    %83 = vector.load %arg0[%c4, %c0_27, %c0_28] : memref<8x8x128xf32, #tpu.memory_space<vmem>>, vector<1x8x128xf32>
    %84 = vector.shape_cast %83 : vector<1x8x128xf32> to vector<8x128xf32>
    %cst_29 = arith.constant dense<0.000000e+00> : vector<8x128xf32>
    %85 = tpu.matmul %82, %0, %cst_29 {dimension_numbers = #tpu.dot_dimension_numbers<[1], [0], [0], [1], [0, 0, 1, 1], [], []>} : vector<8x32xf32>, vector<32x128xf32>, vector<8x128xf32> -> vector<8x128xf32>
    %86 = arith.addf %84, %85 : vector<8x128xf32>
    %87 = arith.negf %86 : vector<8x128xf32>
    %88 = math.exp %87 : vector<8x128xf32>
    %cst_30 = arith.constant 1.000000e+00 : f32
    %89 = vector.broadcast %cst_30 : f32 to vector<8x128xf32>
    %90 = arith.addf %89, %88 : vector<8x128xf32>
    %91 = arith.divf %89, %90 : vector<8x128xf32>
    %92 = math.tanh %86 : vector<8x128xf32>
    %93 = vector.extract_strided_slice %91 {offsets = [0, 0], sizes = [8, 32], strides = [1, 1]} : vector<8x128xf32> to vector<8x32xf32>
    %94 = vector.extract_strided_slice %91 {offsets = [0, 32], sizes = [8, 32], strides = [1, 1]} : vector<8x128xf32> to vector<8x32xf32>
    %95 = vector.extract_strided_slice %92 {offsets = [0, 64], sizes = [8, 32], strides = [1, 1]} : vector<8x128xf32> to vector<8x32xf32>
    %96 = vector.extract_strided_slice %91 {offsets = [0, 96], sizes = [8, 32], strides = [1, 1]} : vector<8x128xf32> to vector<8x32xf32>
    %97 = arith.mulf %94, %80 : vector<8x32xf32>
    %98 = arith.mulf %93, %95 : vector<8x32xf32>
    %99 = arith.addf %97, %98 : vector<8x32xf32>
    %100 = math.tanh %99 : vector<8x32xf32>
    %101 = arith.mulf %96, %100 : vector<8x32xf32>
    %c5 = arith.constant 5 : index
    %c0_31 = arith.constant 0 : index
    %c0_32 = arith.constant 0 : index
    %102 = vector.load %arg0[%c5, %c0_31, %c0_32] : memref<8x8x128xf32, #tpu.memory_space<vmem>>, vector<1x8x128xf32>
    %103 = vector.shape_cast %102 : vector<1x8x128xf32> to vector<8x128xf32>
    %cst_33 = arith.constant dense<0.000000e+00> : vector<8x128xf32>
    %104 = tpu.matmul %101, %0, %cst_33 {dimension_numbers = #tpu.dot_dimension_numbers<[1], [0], [0], [1], [0, 0, 1, 1], [], []>} : vector<8x32xf32>, vector<32x128xf32>, vector<8x128xf32> -> vector<8x128xf32>
    %105 = arith.addf %103, %104 : vector<8x128xf32>
    %106 = arith.negf %105 : vector<8x128xf32>
    %107 = math.exp %106 : vector<8x128xf32>
    %cst_34 = arith.constant 1.000000e+00 : f32
    %108 = vector.broadcast %cst_34 : f32 to vector<8x128xf32>
    %109 = arith.addf %108, %107 : vector<8x128xf32>
    %110 = arith.divf %108, %109 : vector<8x128xf32>
    %111 = math.tanh %105 : vector<8x128xf32>
    %112 = vector.extract_strided_slice %110 {offsets = [0, 0], sizes = [8, 32], strides = [1, 1]} : vector<8x128xf32> to vector<8x32xf32>
    %113 = vector.extract_strided_slice %110 {offsets = [0, 32], sizes = [8, 32], strides = [1, 1]} : vector<8x128xf32> to vector<8x32xf32>
    %114 = vector.extract_strided_slice %111 {offsets = [0, 64], sizes = [8, 32], strides = [1, 1]} : vector<8x128xf32> to vector<8x32xf32>
    %115 = vector.extract_strided_slice %110 {offsets = [0, 96], sizes = [8, 32], strides = [1, 1]} : vector<8x128xf32> to vector<8x32xf32>
    %116 = arith.mulf %113, %99 : vector<8x32xf32>
    %117 = arith.mulf %112, %114 : vector<8x32xf32>
    %118 = arith.addf %116, %117 : vector<8x32xf32>
    %119 = math.tanh %118 : vector<8x32xf32>
    %120 = arith.mulf %115, %119 : vector<8x32xf32>
    %c6 = arith.constant 6 : index
    %c0_35 = arith.constant 0 : index
    %c0_36 = arith.constant 0 : index
    %121 = vector.load %arg0[%c6, %c0_35, %c0_36] : memref<8x8x128xf32, #tpu.memory_space<vmem>>, vector<1x8x128xf32>
    %122 = vector.shape_cast %121 : vector<1x8x128xf32> to vector<8x128xf32>
    %cst_37 = arith.constant dense<0.000000e+00> : vector<8x128xf32>
    %123 = tpu.matmul %120, %0, %cst_37 {dimension_numbers = #tpu.dot_dimension_numbers<[1], [0], [0], [1], [0, 0, 1, 1], [], []>} : vector<8x32xf32>, vector<32x128xf32>, vector<8x128xf32> -> vector<8x128xf32>
    %124 = arith.addf %122, %123 : vector<8x128xf32>
    %125 = arith.negf %124 : vector<8x128xf32>
    %126 = math.exp %125 : vector<8x128xf32>
    %cst_38 = arith.constant 1.000000e+00 : f32
    %127 = vector.broadcast %cst_38 : f32 to vector<8x128xf32>
    %128 = arith.addf %127, %126 : vector<8x128xf32>
    %129 = arith.divf %127, %128 : vector<8x128xf32>
    %130 = math.tanh %124 : vector<8x128xf32>
    %131 = vector.extract_strided_slice %129 {offsets = [0, 0], sizes = [8, 32], strides = [1, 1]} : vector<8x128xf32> to vector<8x32xf32>
    %132 = vector.extract_strided_slice %129 {offsets = [0, 32], sizes = [8, 32], strides = [1, 1]} : vector<8x128xf32> to vector<8x32xf32>
    %133 = vector.extract_strided_slice %130 {offsets = [0, 64], sizes = [8, 32], strides = [1, 1]} : vector<8x128xf32> to vector<8x32xf32>
    %134 = vector.extract_strided_slice %129 {offsets = [0, 96], sizes = [8, 32], strides = [1, 1]} : vector<8x128xf32> to vector<8x32xf32>
    %135 = arith.mulf %132, %118 : vector<8x32xf32>
    %136 = arith.mulf %131, %133 : vector<8x32xf32>
    %137 = arith.addf %135, %136 : vector<8x32xf32>
    %138 = math.tanh %137 : vector<8x32xf32>
    %139 = arith.mulf %134, %138 : vector<8x32xf32>
    %c7 = arith.constant 7 : index
    %c0_39 = arith.constant 0 : index
    %c0_40 = arith.constant 0 : index
    %140 = vector.load %arg0[%c7, %c0_39, %c0_40] : memref<8x8x128xf32, #tpu.memory_space<vmem>>, vector<1x8x128xf32>
    %141 = vector.shape_cast %140 : vector<1x8x128xf32> to vector<8x128xf32>
    %cst_41 = arith.constant dense<0.000000e+00> : vector<8x128xf32>
    %142 = tpu.matmul %139, %0, %cst_41 {dimension_numbers = #tpu.dot_dimension_numbers<[1], [0], [0], [1], [0, 0, 1, 1], [], []>} : vector<8x32xf32>, vector<32x128xf32>, vector<8x128xf32> -> vector<8x128xf32>
    %143 = arith.addf %141, %142 : vector<8x128xf32>
    %144 = arith.negf %143 : vector<8x128xf32>
    %145 = math.exp %144 : vector<8x128xf32>
    %cst_42 = arith.constant 1.000000e+00 : f32
    %146 = vector.broadcast %cst_42 : f32 to vector<8x128xf32>
    %147 = arith.addf %146, %145 : vector<8x128xf32>
    %148 = arith.divf %146, %147 : vector<8x128xf32>
    %149 = math.tanh %143 : vector<8x128xf32>
    %150 = vector.extract_strided_slice %148 {offsets = [0, 0], sizes = [8, 32], strides = [1, 1]} : vector<8x128xf32> to vector<8x32xf32>
    %151 = vector.extract_strided_slice %148 {offsets = [0, 32], sizes = [8, 32], strides = [1, 1]} : vector<8x128xf32> to vector<8x32xf32>
    %152 = vector.extract_strided_slice %149 {offsets = [0, 64], sizes = [8, 32], strides = [1, 1]} : vector<8x128xf32> to vector<8x32xf32>
    %153 = vector.extract_strided_slice %148 {offsets = [0, 96], sizes = [8, 32], strides = [1, 1]} : vector<8x128xf32> to vector<8x32xf32>
    %154 = arith.mulf %151, %137 : vector<8x32xf32>
    %155 = arith.mulf %150, %152 : vector<8x32xf32>
    %156 = arith.addf %154, %155 : vector<8x32xf32>
    %157 = math.tanh %156 : vector<8x32xf32>
    %158 = arith.mulf %153, %157 : vector<8x32xf32>
    %c0_43 = arith.constant 0 : index
    %c0_44 = arith.constant 0 : index
    %c0_45 = arith.constant 0 : index
    %159 = vector.load %arg9[%c0_43, %c0_44, %c0_45] : memref<2x8x32xf32, #tpu.memory_space<vmem>>, vector<1x8x32xf32>
    %160 = vector.shape_cast %159 : vector<1x8x32xf32> to vector<8x32xf32>
    %161 = vector.shape_cast %158 : vector<8x32xf32> to vector<1x8x32xf32>
    tpu.vector_store %arg9[%c0_43, %c0_44, %c0_45], %161 {strides = array<i32>} : memref<2x8x32xf32, #tpu.memory_space<vmem>>, vector<1x8x32xf32>,
    %c0_46 = arith.constant 0 : index
    %c0_47 = arith.constant 0 : index
    %c0_48 = arith.constant 0 : index
    %162 = vector.load %arg10[%c0_46, %c0_47, %c0_48] : memref<2x8x32xf32, #tpu.memory_space<vmem>>, vector<1x8x32xf32>
    %163 = vector.shape_cast %162 : vector<1x8x32xf32> to vector<8x32xf32>
    %164 = vector.shape_cast %156 : vector<8x32xf32> to vector<1x8x32xf32>
    tpu.vector_store %arg10[%c0_46, %c0_47, %c0_48], %164 {strides = array<i32>} : memref<2x8x32xf32, #tpu.memory_space<vmem>>, vector<1x8x32xf32>,
    %c0_49 = arith.constant 0 : index
    %c0_50 = arith.constant 0 : index
    %165 = vector.load %arg4[%c0_49, %c0_50] : memref<64x128xf32, #tpu.memory_space<vmem>>, vector<64x128xf32>
    %c0_51 = arith.constant 0 : index
    %c0_52 = arith.constant 0 : index
    %166 = vector.load %arg5[%c0_51, %c0_52] : memref<1x128xf32, #tpu.memory_space<vmem>>, vector<1x128xf32>
    %c1_53 = arith.constant 1 : index
    %c0_54 = arith.constant 0 : index
    %c0_55 = arith.constant 0 : index
    %167 = vector.load %arg1[%c1_53, %c0_54, %c0_55] : memref<2x8x32xf32, #tpu.memory_space<vmem>>, vector<1x8x32xf32>
    %168 = vector.shape_cast %167 : vector<1x8x32xf32> to vector<8x32xf32>
    %c1_56 = arith.constant 1 : index
    %c0_57 = arith.constant 0 : index
    %c0_58 = arith.constant 0 : index
    %169 = vector.load %arg2[%c1_56, %c0_57, %c0_58] : memref<2x8x32xf32, #tpu.memory_space<vmem>>, vector<1x8x32xf32>
    %170 = vector.shape_cast %169 : vector<1x8x32xf32> to vector<8x32xf32>
    %171 = tpu.concatenate %25, %168 in 1 : vector<8x32xf32>, vector<8x32xf32> -> vector<8x64xf32>
    %cst_59 = arith.constant dense<0.000000e+00> : vector<8x128xf32>
    %172 = tpu.matmul %171, %165, %cst_59 {dimension_numbers = #tpu.dot_dimension_numbers<[1], [0], [0], [1], [0, 0, 1, 1], [], []>} : vector<8x64xf32>, vector<64x128xf32>, vector<8x128xf32> -> vector<8x128xf32>
    %173 = vector.broadcast %166 : vector<1x128xf32> to vector<8x128xf32>
    %174 = arith.addf %172, %173 : vector<8x128xf32>
    %175 = arith.negf %174 : vector<8x128xf32>
    %176 = math.exp %175 : vector<8x128xf32>
    %cst_60 = arith.constant 1.000000e+00 : f32
    %177 = vector.broadcast %cst_60 : f32 to vector<8x128xf32>
    %178 = arith.addf %177, %176 : vector<8x128xf32>
    %179 = arith.divf %177, %178 : vector<8x128xf32>
    %180 = math.tanh %174 : vector<8x128xf32>
    %181 = vector.extract_strided_slice %179 {offsets = [0, 0], sizes = [8, 32], strides = [1, 1]} : vector<8x128xf32> to vector<8x32xf32>
    %182 = vector.extract_strided_slice %179 {offsets = [0, 32], sizes = [8, 32], strides = [1, 1]} : vector<8x128xf32> to vector<8x32xf32>
    %183 = vector.extract_strided_slice %180 {offsets = [0, 64], sizes = [8, 32], strides = [1, 1]} : vector<8x128xf32> to vector<8x32xf32>
    %184 = vector.extract_strided_slice %179 {offsets = [0, 96], sizes = [8, 32], strides = [1, 1]} : vector<8x128xf32> to vector<8x32xf32>
    %185 = arith.mulf %182, %170 : vector<8x32xf32>
    %186 = arith.mulf %181, %183 : vector<8x32xf32>
    %187 = arith.addf %185, %186 : vector<8x32xf32>
    %188 = math.tanh %187 : vector<8x32xf32>
    %189 = arith.mulf %184, %188 : vector<8x32xf32>
    %190 = tpu.concatenate %44, %189 in 1 : vector<8x32xf32>, vector<8x32xf32> -> vector<8x64xf32>
    %cst_61 = arith.constant dense<0.000000e+00> : vector<8x128xf32>
    %191 = tpu.matmul %190, %165, %cst_61 {dimension_numbers = #tpu.dot_dimension_numbers<[1], [0], [0], [1], [0, 0, 1, 1], [], []>} : vector<8x64xf32>, vector<64x128xf32>, vector<8x128xf32> -> vector<8x128xf32>
    %192 = vector.broadcast %166 : vector<1x128xf32> to vector<8x128xf32>
    %193 = arith.addf %191, %192 : vector<8x128xf32>
    %194 = arith.negf %193 : vector<8x128xf32>
    %195 = math.exp %194 : vector<8x128xf32>
    %cst_62 = arith.constant 1.000000e+00 : f32
    %196 = vector.broadcast %cst_62 : f32 to vector<8x128xf32>
    %197 = arith.addf %196, %195 : vector<8x128xf32>
    %198 = arith.divf %196, %197 : vector<8x128xf32>
    %199 = math.tanh %193 : vector<8x128xf32>
    %200 = vector.extract_strided_slice %198 {offsets = [0, 0], sizes = [8, 32], strides = [1, 1]} : vector<8x128xf32> to vector<8x32xf32>
    %201 = vector.extract_strided_slice %198 {offsets = [0, 32], sizes = [8, 32], strides = [1, 1]} : vector<8x128xf32> to vector<8x32xf32>
    %202 = vector.extract_strided_slice %199 {offsets = [0, 64], sizes = [8, 32], strides = [1, 1]} : vector<8x128xf32> to vector<8x32xf32>
    %203 = vector.extract_strided_slice %198 {offsets = [0, 96], sizes = [8, 32], strides = [1, 1]} : vector<8x128xf32> to vector<8x32xf32>
    %204 = arith.mulf %201, %187 : vector<8x32xf32>
    %205 = arith.mulf %200, %202 : vector<8x32xf32>
    %206 = arith.addf %204, %205 : vector<8x32xf32>
    %207 = math.tanh %206 : vector<8x32xf32>
    %208 = arith.mulf %203, %207 : vector<8x32xf32>
    %209 = tpu.concatenate %63, %208 in 1 : vector<8x32xf32>, vector<8x32xf32> -> vector<8x64xf32>
    %cst_63 = arith.constant dense<0.000000e+00> : vector<8x128xf32>
    %210 = tpu.matmul %209, %165, %cst_63 {dimension_numbers = #tpu.dot_dimension_numbers<[1], [0], [0], [1], [0, 0, 1, 1], [], []>} : vector<8x64xf32>, vector<64x128xf32>, vector<8x128xf32> -> vector<8x128xf32>
    %211 = vector.broadcast %166 : vector<1x128xf32> to vector<8x128xf32>
    %212 = arith.addf %210, %211 : vector<8x128xf32>
    %213 = arith.negf %212 : vector<8x128xf32>
    %214 = math.exp %213 : vector<8x128xf32>
    %cst_64 = arith.constant 1.000000e+00 : f32
    %215 = vector.broadcast %cst_64 : f32 to vector<8x128xf32>
    %216 = arith.addf %215, %214 : vector<8x128xf32>
    %217 = arith.divf %215, %216 : vector<8x128xf32>
    %218 = math.tanh %212 : vector<8x128xf32>
    %219 = vector.extract_strided_slice %217 {offsets = [0, 0], sizes = [8, 32], strides = [1, 1]} : vector<8x128xf32> to vector<8x32xf32>
    %220 = vector.extract_strided_slice %217 {offsets = [0, 32], sizes = [8, 32], strides = [1, 1]} : vector<8x128xf32> to vector<8x32xf32>
    %221 = vector.extract_strided_slice %218 {offsets = [0, 64], sizes = [8, 32], strides = [1, 1]} : vector<8x128xf32> to vector<8x32xf32>
    %222 = vector.extract_strided_slice %217 {offsets = [0, 96], sizes = [8, 32], strides = [1, 1]} : vector<8x128xf32> to vector<8x32xf32>
    %223 = arith.mulf %220, %206 : vector<8x32xf32>
    %224 = arith.mulf %219, %221 : vector<8x32xf32>
    %225 = arith.addf %223, %224 : vector<8x32xf32>
    %226 = math.tanh %225 : vector<8x32xf32>
    %227 = arith.mulf %222, %226 : vector<8x32xf32>
    %228 = tpu.concatenate %82, %227 in 1 : vector<8x32xf32>, vector<8x32xf32> -> vector<8x64xf32>
    %cst_65 = arith.constant dense<0.000000e+00> : vector<8x128xf32>
    %229 = tpu.matmul %228, %165, %cst_65 {dimension_numbers = #tpu.dot_dimension_numbers<[1], [0], [0], [1], [0, 0, 1, 1], [], []>} : vector<8x64xf32>, vector<64x128xf32>, vector<8x128xf32> -> vector<8x128xf32>
    %230 = vector.broadcast %166 : vector<1x128xf32> to vector<8x128xf32>
    %231 = arith.addf %229, %230 : vector<8x128xf32>
    %232 = arith.negf %231 : vector<8x128xf32>
    %233 = math.exp %232 : vector<8x128xf32>
    %cst_66 = arith.constant 1.000000e+00 : f32
    %234 = vector.broadcast %cst_66 : f32 to vector<8x128xf32>
    %235 = arith.addf %234, %233 : vector<8x128xf32>
    %236 = arith.divf %234, %235 : vector<8x128xf32>
    %237 = math.tanh %231 : vector<8x128xf32>
    %238 = vector.extract_strided_slice %236 {offsets = [0, 0], sizes = [8, 32], strides = [1, 1]} : vector<8x128xf32> to vector<8x32xf32>
    %239 = vector.extract_strided_slice %236 {offsets = [0, 32], sizes = [8, 32], strides = [1, 1]} : vector<8x128xf32> to vector<8x32xf32>
    %240 = vector.extract_strided_slice %237 {offsets = [0, 64], sizes = [8, 32], strides = [1, 1]} : vector<8x128xf32> to vector<8x32xf32>
    %241 = vector.extract_strided_slice %236 {offsets = [0, 96], sizes = [8, 32], strides = [1, 1]} : vector<8x128xf32> to vector<8x32xf32>
    %242 = arith.mulf %239, %225 : vector<8x32xf32>
    %243 = arith.mulf %238, %240 : vector<8x32xf32>
    %244 = arith.addf %242, %243 : vector<8x32xf32>
    %245 = math.tanh %244 : vector<8x32xf32>
    %246 = arith.mulf %241, %245 : vector<8x32xf32>
    %247 = tpu.concatenate %101, %246 in 1 : vector<8x32xf32>, vector<8x32xf32> -> vector<8x64xf32>
    %cst_67 = arith.constant dense<0.000000e+00> : vector<8x128xf32>
    %248 = tpu.matmul %247, %165, %cst_67 {dimension_numbers = #tpu.dot_dimension_numbers<[1], [0], [0], [1], [0, 0, 1, 1], [], []>} : vector<8x64xf32>, vector<64x128xf32>, vector<8x128xf32> -> vector<8x128xf32>
    %249 = vector.broadcast %166 : vector<1x128xf32> to vector<8x128xf32>
    %250 = arith.addf %248, %249 : vector<8x128xf32>
    %251 = arith.negf %250 : vector<8x128xf32>
    %252 = math.exp %251 : vector<8x128xf32>
    %cst_68 = arith.constant 1.000000e+00 : f32
    %253 = vector.broadcast %cst_68 : f32 to vector<8x128xf32>
    %254 = arith.addf %253, %252 : vector<8x128xf32>
    %255 = arith.divf %253, %254 : vector<8x128xf32>
    %256 = math.tanh %250 : vector<8x128xf32>
    %257 = vector.extract_strided_slice %255 {offsets = [0, 0], sizes = [8, 32], strides = [1, 1]} : vector<8x128xf32> to vector<8x32xf32>
    %258 = vector.extract_strided_slice %255 {offsets = [0, 32], sizes = [8, 32], strides = [1, 1]} : vector<8x128xf32> to vector<8x32xf32>
    %259 = vector.extract_strided_slice %256 {offsets = [0, 64], sizes = [8, 32], strides = [1, 1]} : vector<8x128xf32> to vector<8x32xf32>
    %260 = vector.extract_strided_slice %255 {offsets = [0, 96], sizes = [8, 32], strides = [1, 1]} : vector<8x128xf32> to vector<8x32xf32>
    %261 = arith.mulf %258, %244 : vector<8x32xf32>
    %262 = arith.mulf %257, %259 : vector<8x32xf32>
    %263 = arith.addf %261, %262 : vector<8x32xf32>
    %264 = math.tanh %263 : vector<8x32xf32>
    %265 = arith.mulf %260, %264 : vector<8x32xf32>
    %266 = tpu.concatenate %120, %265 in 1 : vector<8x32xf32>, vector<8x32xf32> -> vector<8x64xf32>
    %cst_69 = arith.constant dense<0.000000e+00> : vector<8x128xf32>
    %267 = tpu.matmul %266, %165, %cst_69 {dimension_numbers = #tpu.dot_dimension_numbers<[1], [0], [0], [1], [0, 0, 1, 1], [], []>} : vector<8x64xf32>, vector<64x128xf32>, vector<8x128xf32> -> vector<8x128xf32>
    %268 = vector.broadcast %166 : vector<1x128xf32> to vector<8x128xf32>
    %269 = arith.addf %267, %268 : vector<8x128xf32>
    %270 = arith.negf %269 : vector<8x128xf32>
    %271 = math.exp %270 : vector<8x128xf32>
    %cst_70 = arith.constant 1.000000e+00 : f32
    %272 = vector.broadcast %cst_70 : f32 to vector<8x128xf32>
    %273 = arith.addf %272, %271 : vector<8x128xf32>
    %274 = arith.divf %272, %273 : vector<8x128xf32>
    %275 = math.tanh %269 : vector<8x128xf32>
    %276 = vector.extract_strided_slice %274 {offsets = [0, 0], sizes = [8, 32], strides = [1, 1]} : vector<8x128xf32> to vector<8x32xf32>
    %277 = vector.extract_strided_slice %274 {offsets = [0, 32], sizes = [8, 32], strides = [1, 1]} : vector<8x128xf32> to vector<8x32xf32>
    %278 = vector.extract_strided_slice %275 {offsets = [0, 64], sizes = [8, 32], strides = [1, 1]} : vector<8x128xf32> to vector<8x32xf32>
    %279 = vector.extract_strided_slice %274 {offsets = [0, 96], sizes = [8, 32], strides = [1, 1]} : vector<8x128xf32> to vector<8x32xf32>
    %280 = arith.mulf %277, %263 : vector<8x32xf32>
    %281 = arith.mulf %276, %278 : vector<8x32xf32>
    %282 = arith.addf %280, %281 : vector<8x32xf32>
    %283 = math.tanh %282 : vector<8x32xf32>
    %284 = arith.mulf %279, %283 : vector<8x32xf32>
    %285 = tpu.concatenate %139, %284 in 1 : vector<8x32xf32>, vector<8x32xf32> -> vector<8x64xf32>
    %cst_71 = arith.constant dense<0.000000e+00> : vector<8x128xf32>
    %286 = tpu.matmul %285, %165, %cst_71 {dimension_numbers = #tpu.dot_dimension_numbers<[1], [0], [0], [1], [0, 0, 1, 1], [], []>} : vector<8x64xf32>, vector<64x128xf32>, vector<8x128xf32> -> vector<8x128xf32>
    %287 = vector.broadcast %166 : vector<1x128xf32> to vector<8x128xf32>
    %288 = arith.addf %286, %287 : vector<8x128xf32>
    %289 = arith.negf %288 : vector<8x128xf32>
    %290 = math.exp %289 : vector<8x128xf32>
    %cst_72 = arith.constant 1.000000e+00 : f32
    %291 = vector.broadcast %cst_72 : f32 to vector<8x128xf32>
    %292 = arith.addf %291, %290 : vector<8x128xf32>
    %293 = arith.divf %291, %292 : vector<8x128xf32>
    %294 = math.tanh %288 : vector<8x128xf32>
    %295 = vector.extract_strided_slice %293 {offsets = [0, 0], sizes = [8, 32], strides = [1, 1]} : vector<8x128xf32> to vector<8x32xf32>
    %296 = vector.extract_strided_slice %293 {offsets = [0, 32], sizes = [8, 32], strides = [1, 1]} : vector<8x128xf32> to vector<8x32xf32>
    %297 = vector.extract_strided_slice %294 {offsets = [0, 64], sizes = [8, 32], strides = [1, 1]} : vector<8x128xf32> to vector<8x32xf32>
    %298 = vector.extract_strided_slice %293 {offsets = [0, 96], sizes = [8, 32], strides = [1, 1]} : vector<8x128xf32> to vector<8x32xf32>
    %299 = arith.mulf %296, %282 : vector<8x32xf32>
    %300 = arith.mulf %295, %297 : vector<8x32xf32>
    %301 = arith.addf %299, %300 : vector<8x32xf32>
    %302 = math.tanh %301 : vector<8x32xf32>
    %303 = arith.mulf %298, %302 : vector<8x32xf32>
    %304 = tpu.concatenate %158, %303 in 1 : vector<8x32xf32>, vector<8x32xf32> -> vector<8x64xf32>
    %cst_73 = arith.constant dense<0.000000e+00> : vector<8x128xf32>
    %305 = tpu.matmul %304, %165, %cst_73 {dimension_numbers = #tpu.dot_dimension_numbers<[1], [0], [0], [1], [0, 0, 1, 1], [], []>} : vector<8x64xf32>, vector<64x128xf32>, vector<8x128xf32> -> vector<8x128xf32>
    %306 = vector.broadcast %166 : vector<1x128xf32> to vector<8x128xf32>
    %307 = arith.addf %305, %306 : vector<8x128xf32>
    %308 = arith.negf %307 : vector<8x128xf32>
    %309 = math.exp %308 : vector<8x128xf32>
    %cst_74 = arith.constant 1.000000e+00 : f32
    %310 = vector.broadcast %cst_74 : f32 to vector<8x128xf32>
    %311 = arith.addf %310, %309 : vector<8x128xf32>
    %312 = arith.divf %310, %311 : vector<8x128xf32>
    %313 = math.tanh %307 : vector<8x128xf32>
    %314 = vector.extract_strided_slice %312 {offsets = [0, 0], sizes = [8, 32], strides = [1, 1]} : vector<8x128xf32> to vector<8x32xf32>
    %315 = vector.extract_strided_slice %312 {offsets = [0, 32], sizes = [8, 32], strides = [1, 1]} : vector<8x128xf32> to vector<8x32xf32>
    %316 = vector.extract_strided_slice %313 {offsets = [0, 64], sizes = [8, 32], strides = [1, 1]} : vector<8x128xf32> to vector<8x32xf32>
    %317 = vector.extract_strided_slice %312 {offsets = [0, 96], sizes = [8, 32], strides = [1, 1]} : vector<8x128xf32> to vector<8x32xf32>
    %318 = arith.mulf %315, %301 : vector<8x32xf32>
    %319 = arith.mulf %314, %316 : vector<8x32xf32>
    %320 = arith.addf %318, %319 : vector<8x32xf32>
    %321 = math.tanh %320 : vector<8x32xf32>
    %322 = arith.mulf %317, %321 : vector<8x32xf32>
    %c1_75 = arith.constant 1 : index
    %c0_76 = arith.constant 0 : index
    %c0_77 = arith.constant 0 : index
    %323 = vector.load %arg9[%c1_75, %c0_76, %c0_77] : memref<2x8x32xf32, #tpu.memory_space<vmem>>, vector<1x8x32xf32>
    %324 = vector.shape_cast %323 : vector<1x8x32xf32> to vector<8x32xf32>
    %325 = vector.shape_cast %322 : vector<8x32xf32> to vector<1x8x32xf32>
    tpu.vector_store %arg9[%c1_75, %c0_76, %c0_77], %325 {strides = array<i32>} : memref<2x8x32xf32, #tpu.memory_space<vmem>>, vector<1x8x32xf32>,
    %c1_78 = arith.constant 1 : index
    %c0_79 = arith.constant 0 : index
    %c0_80 = arith.constant 0 : index
    %326 = vector.load %arg10[%c1_78, %c0_79, %c0_80] : memref<2x8x32xf32, #tpu.memory_space<vmem>>, vector<1x8x32xf32>
    %327 = vector.shape_cast %326 : vector<1x8x32xf32> to vector<8x32xf32>
    %328 = vector.shape_cast %320 : vector<8x32xf32> to vector<1x8x32xf32>
    tpu.vector_store %arg10[%c1_78, %c0_79, %c0_80], %328 {strides = array<i32>} : memref<2x8x32xf32, #tpu.memory_space<vmem>>, vector<1x8x32xf32>,
    %cst_81 = arith.constant 0.000000e+00 : f32
    %329 = vector.broadcast %cst_81 : f32 to vector<8x32xf32>
    %330 = arith.maximumf %189, %329 : vector<8x32xf32>
    %cst_82 = arith.constant dense<0.000000e+00> : vector<8x4xf32>
    %331 = tpu.matmul %330, %1, %cst_82 {dimension_numbers = #tpu.dot_dimension_numbers<[1], [0], [0], [1], [0, 0, 1, 1], [], []>} : vector<8x32xf32>, vector<32x4xf32>, vector<8x4xf32> -> vector<8x4xf32>
    %332 = vector.broadcast %2 : vector<1x4xf32> to vector<8x4xf32>
    %333 = arith.addf %331, %332 : vector<8x4xf32>
    %c0_83 = arith.constant 0 : index
    %c0_84 = arith.constant 0 : index
    %334 = vector.load %arg8[%c0_83, %c0_84] : memref<64x4xf32, #tpu.memory_space<vmem>>, vector<8x4xf32>
    tpu.vector_store %arg8[%c0_83, %c0_84], %333 {strides = array<i32>} : memref<64x4xf32, #tpu.memory_space<vmem>>, vector<8x4xf32>,
    %cst_85 = arith.constant 0.000000e+00 : f32
    %335 = vector.broadcast %cst_85 : f32 to vector<8x32xf32>
    %336 = arith.maximumf %208, %335 : vector<8x32xf32>
    %cst_86 = arith.constant dense<0.000000e+00> : vector<8x4xf32>
    %337 = tpu.matmul %336, %1, %cst_86 {dimension_numbers = #tpu.dot_dimension_numbers<[1], [0], [0], [1], [0, 0, 1, 1], [], []>} : vector<8x32xf32>, vector<32x4xf32>, vector<8x4xf32> -> vector<8x4xf32>
    %338 = vector.broadcast %2 : vector<1x4xf32> to vector<8x4xf32>
    %339 = arith.addf %337, %338 : vector<8x4xf32>
    %c8 = arith.constant 8 : index
    %c0_87 = arith.constant 0 : index
    %340 = vector.load %arg8[%c8, %c0_87] : memref<64x4xf32, #tpu.memory_space<vmem>>, vector<8x4xf32>
    tpu.vector_store %arg8[%c8, %c0_87], %339 {strides = array<i32>} : memref<64x4xf32, #tpu.memory_space<vmem>>, vector<8x4xf32>,
    %cst_88 = arith.constant 0.000000e+00 : f32
    %341 = vector.broadcast %cst_88 : f32 to vector<8x32xf32>
    %342 = arith.maximumf %227, %341 : vector<8x32xf32>
    %cst_89 = arith.constant dense<0.000000e+00> : vector<8x4xf32>
    %343 = tpu.matmul %342, %1, %cst_89 {dimension_numbers = #tpu.dot_dimension_numbers<[1], [0], [0], [1], [0, 0, 1, 1], [], []>} : vector<8x32xf32>, vector<32x4xf32>, vector<8x4xf32> -> vector<8x4xf32>
    %344 = vector.broadcast %2 : vector<1x4xf32> to vector<8x4xf32>
    %345 = arith.addf %343, %344 : vector<8x4xf32>
    %c16 = arith.constant 16 : index
    %c0_90 = arith.constant 0 : index
    %346 = vector.load %arg8[%c16, %c0_90] : memref<64x4xf32, #tpu.memory_space<vmem>>, vector<8x4xf32>
    tpu.vector_store %arg8[%c16, %c0_90], %345 {strides = array<i32>} : memref<64x4xf32, #tpu.memory_space<vmem>>, vector<8x4xf32>,
    %cst_91 = arith.constant 0.000000e+00 : f32
    %347 = vector.broadcast %cst_91 : f32 to vector<8x32xf32>
    %348 = arith.maximumf %246, %347 : vector<8x32xf32>
    %cst_92 = arith.constant dense<0.000000e+00> : vector<8x4xf32>
    %349 = tpu.matmul %348, %1, %cst_92 {dimension_numbers = #tpu.dot_dimension_numbers<[1], [0], [0], [1], [0, 0, 1, 1], [], []>} : vector<8x32xf32>, vector<32x4xf32>, vector<8x4xf32> -> vector<8x4xf32>
    %350 = vector.broadcast %2 : vector<1x4xf32> to vector<8x4xf32>
    %351 = arith.addf %349, %350 : vector<8x4xf32>
    %c24 = arith.constant 24 : index
    %c0_93 = arith.constant 0 : index
    %352 = vector.load %arg8[%c24, %c0_93] : memref<64x4xf32, #tpu.memory_space<vmem>>, vector<8x4xf32>
    tpu.vector_store %arg8[%c24, %c0_93], %351 {strides = array<i32>} : memref<64x4xf32, #tpu.memory_space<vmem>>, vector<8x4xf32>,
    %cst_94 = arith.constant 0.000000e+00 : f32
    %353 = vector.broadcast %cst_94 : f32 to vector<8x32xf32>
    %354 = arith.maximumf %265, %353 : vector<8x32xf32>
    %cst_95 = arith.constant dense<0.000000e+00> : vector<8x4xf32>
    %355 = tpu.matmul %354, %1, %cst_95 {dimension_numbers = #tpu.dot_dimension_numbers<[1], [0], [0], [1], [0, 0, 1, 1], [], []>} : vector<8x32xf32>, vector<32x4xf32>, vector<8x4xf32> -> vector<8x4xf32>
    %356 = vector.broadcast %2 : vector<1x4xf32> to vector<8x4xf32>
    %357 = arith.addf %355, %356 : vector<8x4xf32>
    %c32 = arith.constant 32 : index
    %c0_96 = arith.constant 0 : index
    %358 = vector.load %arg8[%c32, %c0_96] : memref<64x4xf32, #tpu.memory_space<vmem>>, vector<8x4xf32>
    tpu.vector_store %arg8[%c32, %c0_96], %357 {strides = array<i32>} : memref<64x4xf32, #tpu.memory_space<vmem>>, vector<8x4xf32>,
    %cst_97 = arith.constant 0.000000e+00 : f32
    %359 = vector.broadcast %cst_97 : f32 to vector<8x32xf32>
    %360 = arith.maximumf %284, %359 : vector<8x32xf32>
    %cst_98 = arith.constant dense<0.000000e+00> : vector<8x4xf32>
    %361 = tpu.matmul %360, %1, %cst_98 {dimension_numbers = #tpu.dot_dimension_numbers<[1], [0], [0], [1], [0, 0, 1, 1], [], []>} : vector<8x32xf32>, vector<32x4xf32>, vector<8x4xf32> -> vector<8x4xf32>
    %362 = vector.broadcast %2 : vector<1x4xf32> to vector<8x4xf32>
    %363 = arith.addf %361, %362 : vector<8x4xf32>
    %c40 = arith.constant 40 : index
    %c0_99 = arith.constant 0 : index
    %364 = vector.load %arg8[%c40, %c0_99] : memref<64x4xf32, #tpu.memory_space<vmem>>, vector<8x4xf32>
    tpu.vector_store %arg8[%c40, %c0_99], %363 {strides = array<i32>} : memref<64x4xf32, #tpu.memory_space<vmem>>, vector<8x4xf32>,
    %cst_100 = arith.constant 0.000000e+00 : f32
    %365 = vector.broadcast %cst_100 : f32 to vector<8x32xf32>
    %366 = arith.maximumf %303, %365 : vector<8x32xf32>
    %cst_101 = arith.constant dense<0.000000e+00> : vector<8x4xf32>
    %367 = tpu.matmul %366, %1, %cst_101 {dimension_numbers = #tpu.dot_dimension_numbers<[1], [0], [0], [1], [0, 0, 1, 1], [], []>} : vector<8x32xf32>, vector<32x4xf32>, vector<8x4xf32> -> vector<8x4xf32>
    %368 = vector.broadcast %2 : vector<1x4xf32> to vector<8x4xf32>
    %369 = arith.addf %367, %368 : vector<8x4xf32>
    %c48 = arith.constant 48 : index
    %c0_102 = arith.constant 0 : index
    %370 = vector.load %arg8[%c48, %c0_102] : memref<64x4xf32, #tpu.memory_space<vmem>>, vector<8x4xf32>
    tpu.vector_store %arg8[%c48, %c0_102], %369 {strides = array<i32>} : memref<64x4xf32, #tpu.memory_space<vmem>>, vector<8x4xf32>,
    %cst_103 = arith.constant 0.000000e+00 : f32
    %371 = vector.broadcast %cst_103 : f32 to vector<8x32xf32>
    %372 = arith.maximumf %322, %371 : vector<8x32xf32>
    %cst_104 = arith.constant dense<0.000000e+00> : vector<8x4xf32>
    %373 = tpu.matmul %372, %1, %cst_104 {dimension_numbers = #tpu.dot_dimension_numbers<[1], [0], [0], [1], [0, 0, 1, 1], [], []>} : vector<8x32xf32>, vector<32x4xf32>, vector<8x4xf32> -> vector<8x4xf32>
    %374 = vector.broadcast %2 : vector<1x4xf32> to vector<8x4xf32>
    %375 = arith.addf %373, %374 : vector<8x4xf32>
    %c56 = arith.constant 56 : index
    %c0_105 = arith.constant 0 : index
    %376 = vector.load %arg8[%c56, %c0_105] : memref<64x4xf32, #tpu.memory_space<vmem>>, vector<8x4xf32>
    tpu.vector_store %arg8[%c56, %c0_105], %375 {strides = array<i32>} : memref<64x4xf32, #tpu.memory_space<vmem>>, vector<8x4xf32>,
    return
  }
}

</mosaic_0001>

<bundles_post_ra>
// kernel: tpu_custom_call.1
= control target key start
LH: loop header
LB: loop body
LE: loop exit
PB: predicated region body
PF: predicated region fallthrough
CT: control target
= control target key end

     0   :  { %16 = vsyncpa [#allocation3], 0  ;;  %s4079_s0 = inlined_call_operand.hbm [shape: f32[8,8,128], index: 0, kind: input, shape index: {}]   ;;  %s4080_s1 = inlined_call_operand.hbm [shape: f32[2,8,32], index: 1, kind: input, shape index: {}]   ;;  %s4081_s2 = inlined_call_operand.hbm [shape: f32[2,8,32], index: 2, kind: input, shape index: {}]   ;;  %s4082_s3 = inlined_call_operand.vmem [shape: f32[32,128], index: 3, kind: input, shape index: {}]   ;;  %s4083_s4 = inlined_call_operand.hbm [shape: f32[64,128], index: 4, kind: input, shape index: {}]   ;;  %s4084_s5 = inlined_call_operand.vmem [shape: f32[1,128], index: 5, kind: input, shape index: {}]   ;;  %s4085_s6 = inlined_call_operand.vmem [shape: f32[32,4], index: 6, kind: input, shape index: {}]   ;;  %s4086_s7 = inlined_call_operand.vmem [shape: f32[1,4], index: 7, kind: input, shape index: {}]   ;;  %s4087_s8 = inlined_call_operand.vmem [shape: f32[64,4], index: 8, kind: output, shape index: {0}]   ;;  %s4088_s9 = inlined_call_operand.hbm [shape: f32[2,8,32], index: 9, kind: output, shape index: {1}]   ;;  %s4089_s10 = inlined_call_operand.hbm [shape: f32[2,8,32], index: 10, kind: output, shape index: {2}]  }
   0x1   :  { %17 = vsyncpa [#allocation6], 0 }
   0x2   :  { %18 = vsyncpa [#allocation9], 0 }
   0x3   :  { %19 = vsyncpa [#allocation4], 0 }
   0x4   :  { %20 = vsyncpa [#allocation12], 0  ;;  %s3447_s13 = smov [#allocation5]   ;;  %s3448_s15 = smov [#allocation2]  }
   0x5   :  { %s38_s14 = sshll.u32 %s3447_s13, 4  ;;  %s26_s16 = sshll.u32 %s3448_s15, 4  ;;  %s39_s14 = int_to_ptr.vmem [resolvable:$true] %s38_s14  ;;  %s3516_s16 = int_to_ptr.vmem [resolvable:$true] %s26_s16 }
   0x6   :  { %s3305_s19 = scalar_lea.hbm %s4080_s1, 256 }
   0x7   :  { %p3306_p0 = scmp.ne.s32.totalorder %s4080_s1, %s3305_s19  ;;  %p3309_p1 = scmp.lt.u32.totalorder %s3305_s19, %s4080_s1 }
   0x9   :  { %p3311_p2 = pnand %p3309_p1, %p3306_p0 }
   0xb   :  { %3314 = shalt.err (!%p3311_p2)
}
   0xc   :  { %s3315_s24 = scalar_lea.vmem %s39_s14, 256  ;;  %p3320_p4 = scmp.lt.s32.totalorder %s39_s14, %s39_s14 }
   0xd   :  { %p3316_p3 = scmp.ne.s32.totalorder %s39_s14, %s3315_s24  ;;  %p3321_p5 = scmp.lt.s32.totalorder %s3315_s24, %s3315_s24 }
   0xf   :  { %p3322_p6 = por %p3321_p5, %p3320_p4 }
  0x11   :  { %p3323_p7 = pnand %p3322_p6, %p3316_p3 }
  0x13   :  { %3326 = shalt.err (!%p3323_p7)
}
  0x14   :  { %s3449_s25 = smov 128   ;;  %s3450_s26 = smov 8  }
  0x15   :  { %44 = dma.hbm_to_vmem [thread:$0]  %s4080_s1, 256, %s39_s14, [#allocation6], %s3449_s25, %s3449_s25, %s3450_s26  }
  0x16   :  { %s3327_s11 = scalar_lea.hbm %s4079_s0, 1024 }
  0x17   :  { %p3328_p8 = scmp.ne.s32.totalorder %s4079_s0, %s3327_s11  ;;  %p3331_p9 = scmp.lt.u32.totalorder %s3327_s11, %s4079_s0 }
  0x19   :  { %p3333_p10 = pnand %p3331_p9, %p3328_p8 }
  0x1b   :  { %3336 = shalt.err (!%p3333_p10)
}
  0x1c   :  { %s3337_s18 = scalar_lea.vmem %s3516_s16, 1024  ;;  %p3342_p12 = scmp.lt.s32.totalorder %s3516_s16, %s3516_s16 }
  0x1d   :  { %p3338_p11 = scmp.ne.s32.totalorder %s3516_s16, %s3337_s18  ;;  %p3343_p13 = scmp.lt.s32.totalorder %s3337_s18, %s3337_s18 }
  0x1f   :  { %p3344_p0 = por %p3343_p13, %p3342_p12 }
  0x21   :  { %p3345_p1 = pnand %p3344_p0, %p3338_p11 }
  0x23   :  { %3348 = shalt.err (!%p3345_p1)
}
  0x24   :  { %32 = dma.hbm_to_vmem [thread:$0]  %s4079_s0, 1024, %s3516_s16, [#allocation3], %s3449_s25, %s3449_s25, %s3450_s26  }
  0x25   :  { %s3451_s19 = smov [#allocation7]   ;;  %s3452_s21 = smov [#allocation8]  }
  0x26   :  { %s50_s20 = sshll.u32 %s3451_s19, 4  ;;  %s64_s22 = sshll.u32 %s3452_s21, 4  ;;  %s51_s20 = int_to_ptr.vmem [resolvable:$true] %s50_s20  ;;  %s3553_s22 = int_to_ptr.vmem [resolvable:$true] %s64_s22 }
  0x27   :  { %s3349_s27 = scalar_lea.hbm %s4081_s2, 256 }
  0x28   :  { %p3350_p2 = scmp.ne.s32.totalorder %s4081_s2, %s3349_s27  ;;  %p3353_p3 = scmp.lt.u32.totalorder %s3349_s27, %s4081_s2 }
  0x2a   :  { %p3355_p4 = pnand %p3353_p3, %p3350_p2 }
  0x2c   :  { %3358 = shalt.err (!%p3355_p4)
}
  0x2d   :  { %s3359_s0 = scalar_lea.vmem %s51_s20, 256  ;;  %p3364_p6 = scmp.lt.s32.totalorder %s51_s20, %s51_s20 }
  0x2e   :  { %p3360_p5 = scmp.ne.s32.totalorder %s51_s20, %s3359_s0  ;;  %p3365_p7 = scmp.lt.s32.totalorder %s3359_s0, %s3359_s0 }
  0x30   :  { %p3366_p8 = por %p3365_p7, %p3364_p6 }
  0x32   :  { %p3367_p9 = pnand %p3366_p8, %p3360_p5 }
  0x34   :  { %3370 = shalt.err (!%p3367_p9)
}
  0x35   :  { %56 = dma.hbm_to_vmem [thread:$0]  %s4081_s2, 256, %s51_s20, [#allocation6], %s3449_s25, %s3449_s25, %s3450_s26  }
  0x36   :  { %s3371_s17 = scalar_lea.hbm %s4083_s4, 1024 }
  0x37   :  { %p3372_p10 = scmp.ne.s32.totalorder %s4083_s4, %s3371_s17  ;;  %p3375_p11 = scmp.lt.u32.totalorder %s3371_s17, %s4083_s4 }
  0x39   :  { %p3377_p12 = pnand %p3375_p11, %p3372_p10 }
  0x3b   :  { %3380 = shalt.err (!%p3377_p12)
}
  0x3c   :  { %s3381_s21 = scalar_lea.vmem %s3553_s22, 1024  ;;  %p3386_p0 = scmp.lt.s32.totalorder %s3553_s22, %s3553_s22 }
  0x3d   :  { %p3382_p13 = scmp.ne.s32.totalorder %s3553_s22, %s3381_s21  ;;  %p3387_p1 = scmp.lt.s32.totalorder %s3381_s21, %s3381_s21 }
  0x3f   :  { %p3388_p2 = por %p3387_p1, %p3386_p0 }
  0x41   :  { %p3389_p3 = pnand %p3388_p2, %p3382_p13 }
  0x43   :  { %3392 = shalt.err (!%p3389_p3)
}
  0x44   :  { %70 = dma.hbm_to_vmem [thread:$0]  %s4083_s4, 1024, %s3553_s22, [#allocation9], %s3449_s25, %s3449_s25, %s3450_s26  }
  0x45   :  { %3437 = dma.done.wait [#allocation3], 1024  }
  0x46   :  { %3438 = vsyncadd [#allocation3], 4294966272 }
  0x47   :  { %3439 = dma.done.wait [#allocation6], 512  }
  0x48   :  { %3440 = vsyncadd [#allocation6], 4294966784 }
  0x49   :  { %3441 = dma.done.wait [#allocation9], 1024  }
  0x4a   :  { %3442 = vsyncadd [#allocation9], 4294966272  ;;  %v3453_v0 = vmov 0.0|0.0   ;;  %vm3454_vm0 = vmmov 0   ;;  %v3455_v1 = vmov 0.0   ;;  %v89_v2 = vld [vmem:[%s4082_s3] sm:$0xff] }
  0x4b   :  { %2971 = vmatprep.subr.bf16.mxu0 %v3453_v0  ;;  %2651 = vmatprep.mubr.msk.f32.mxu0 %vm3454_vm0, %v3455_v1  ;;  %v90_v3 = vld [vmem:[%s4082_s3 + $0x8] sm:$0xff]  ;;  %v91_v4 = vld [vmem:[%s4082_s3 + $0x10] sm:$0xff]  ;;  %v92_v6 = vld [vmem:[%s4082_s3 + $0x18] sm:$0xff]  ;;  %vm101_vm1 = vcmask 261120   ;;  %s3456_s3 = smov 64   ;;  %s3457_s11 = smov 32  }
  0x4c   :  { %2977 = vmatprep.subr.bf16.mxu1 %v3453_v0  ;;  %2662 = vmatprep.mubr.msk.f32.mxu1 %vm3454_vm0, %v3455_v1  ;;  %v3605_v5 = vpack.c.bf16 %v90_v3, %v89_v2  ;;  %v3611_v7 = vpack.c.bf16 %v92_v6, %v91_v4  ;;  %v98_v8 = vld [vmem:[#allocation5] sm:$0xff]  ;;  %v99_v14 = vld [vmem:[#allocation7] sm:$0xff]  ;;  %v205_v29 = vld [vmem:[#allocation2 + $0x8] sm:$0xff]  ;;  %vm953_vm2 = vcmask 523264   ;;  %vm1869_vm3 = vcmask 31744   ;;  %s3459_s28 = smov [#allocation10]  }
  0x4d   :  { %v100_v9 = vld [vmem:[#allocation2] sm:$0xff]  ;;  %v307_v47 = vld [vmem:[#allocation2 + $0x10] sm:$0xff]  ;;  %v409_v3 = vld [vmem:[#allocation2 + $0x18] sm:$0xff]  ;;  %s2417_s29 = sshll.u32 %s3459_s28, 4  ;;  %s3460_s30 = smov [#allocation11]   ;;  %s2418_s29 = int_to_ptr.vmem [resolvable:$true] %s2417_s29 }
  0x4e   :  { %2973 = vmatpush3.bf16.msra.mxu0 %v3605_v5  ;;  %2979 = vmatpush3.bf16.msra.mxu1 %v3605_v5  ;;  %p3398_p5 = scmp.lt.s32.totalorder %s2418_s29, %s2418_s29 }
  0x4f   :  { %2974 = vmatprep.subr.bf16.mxu0 %v3453_v0  ;;  %2980 = vmatprep.subr.bf16.mxu1 %v3453_v0 }
  0x52   :  { %2976 = vmatpush3.bf16.msra.mxu0 %v3611_v7  ;;  %2982 = vmatpush3.bf16.msra.mxu1 %v3611_v7 }
  0x53   :  { %2983 = vmatprep.subr.bf16.mxu0 %v3453_v0  ;;  %2989 = vmatprep.subr.bf16.mxu1 %v3453_v0 }
  0x55   :  { %2652 = vmatmul.mubr.msk.f32.vlgmr.msra.gmra.mrb[0].mxu0 %vm101_vm1, %v98_v8 }
  0x56   :  { %2985 = vmatpush3.bf16.msra.mxu0 %v3605_v5  ;;  %2673 = vmatprep.mubr.msk.f32.mxu0 %vm3454_vm0, %v3455_v1 }
  0x57   :  { %2986 = vmatprep.subr.bf16.mxu0 %v3453_v0 }
  0x5a   :  { %2988 = vmatpush3.bf16.msra.mxu0 %v3611_v7 }
  0x5b   :  { %2995 = vmatprep.subr.bf16.mxu0 %v3453_v0 }
 0x128   :  { %v171_v10 = vpop.f32.mrb[0].mxu0 }
 0x129   :  { %v175_v11 = vadd.f32 %v171_v10, %v100_v9  ;;  %v2653_v12 = vpop.f32.mrb[1].mxu0 }
 0x12b   :  { %3177 = vtanh.f32 %v175_v11  ;;  %v2450_v15 = vmul.f32 -1.442695, %v175_v11 }
 0x12d   :  { %3179 = vpow2.f32 %v2450_v15 }
 0x135   :  { %v3178_v13 = vpop.eup %3177 }
 0x136   :  { %189 = vrot.lane.b32.xlu0 %v3178_v13, %s3456_s3 }
 0x137   :  { %v3180_v16 = vpop.eup %3179 }
 0x138   :  { %v179_v17 = vadd.f32 1.0, %v3180_v16 }
 0x13a   :  { %184 = vrot.lane.b32.xlu0 %v99_v14, %s3457_s11  ;;  %3181 = vrcp.f32 %v179_v17 }
 0x144   :  { %v3182_v18 = vpop.eup %3181 }
 0x1a8   :  { %v190_v19 = vpop.permute.xlu0 %189 }
 0x1a9   :  { %v192_v20 = vmul.f32 %v3182_v18, %v190_v19 }
 0x1ab   :  { %194 = vrot.lane.b32.xlu1 %v192_v20, %s3457_s11 }
 0x1ac   :  { %v185_v21 = vpop.permute.xlu0 %184 }
 0x1ad   :  { %v187_v22 = vmul.f32 %v3182_v18, %v185_v21 }
 0x21d   :  { %v195_v23 = vpop.permute.xlu1 %194 }
 0x21e   :  { %v197_v24 = vadd.f32 %v195_v23, %v187_v22  ;;  %v511_v23 = vld [vmem:[#allocation2 + $0x20] sm:$0xff] }
 0x220   :  { %3183 = vtanh.f32 %v197_v24 }
 0x22a   :  { %v3184_v25 = vpop.eup %3183 }
 0x22b   :  { %200 = vrot.lane.b32.xlu1 %v3184_v25, %s3456_s3 }
 0x29d   :  { %v201_v26 = vpop.permute.xlu1 %200 }
 0x29e   :  { %v203_v27 = vmul.f32 %v3182_v18, %v201_v26 }
 0x2a0   :  { %207 = vrot.lane.b32.xlu0 %v203_v27, %s3457_s11 }
 0x312   :  { %v3632_v28 = vpop.permute.xlu0 %207 }
 0x313   :  { %2663 = vmatmul.mubr.msk.f32.vlgmr.msra.gmra.mrb[0].mxu1 %vm101_vm1, %v3632_v28 }
 0x314   :  { %2991 = vmatpush3.bf16.msra.mxu1 %v3605_v5  ;;  %2684 = vmatprep.mubr.msk.f32.mxu1 %vm3454_vm0, %v3455_v1 }
 0x315   :  { %2992 = vmatprep.subr.bf16.mxu1 %v3453_v0 }
 0x318   :  { %2994 = vmatpush3.bf16.msra.mxu1 %v3611_v7 }
 0x319   :  { %3001 = vmatprep.subr.bf16.mxu1 %v3453_v0 }
 0x3e6   :  { %v277_v30 = vpop.f32.mrb[0].mxu1 }
 0x3e7   :  { %v281_v31 = vadd.f32 %v277_v30, %v205_v29  ;;  %v2664_v32 = vpop.f32.mrb[1].mxu1 }
 0x3e9   :  { %3185 = vtanh.f32 %v281_v31  ;;  %v2452_v34 = vmul.f32 -1.442695, %v281_v31 }
 0x3eb   :  { %3187 = vpow2.f32 %v2452_v34 }
 0x3f3   :  { %v3186_v33 = vpop.eup %3185 }
 0x3f4   :  { %291 = vrot.lane.b32.xlu1 %v3186_v33, %s3456_s3 }
 0x3f5   :  { %v3188_v35 = vpop.eup %3187 }
 0x3f6   :  { %v285_v36 = vadd.f32 1.0, %v3188_v35 }
 0x3f8   :  { %3189 = vrcp.f32 %v285_v36 }
 0x402   :  { %v3190_v37 = vpop.eup %3189 }
 0x403   :  { %v289_v40 = vmul.f32 %v3190_v37, %v197_v24 }
 0x466   :  { %v292_v38 = vpop.permute.xlu1 %291 }
 0x467   :  { %v294_v39 = vmul.f32 %v3190_v37, %v292_v38 }
 0x469   :  { %296 = vrot.lane.b32.xlu0 %v294_v39, %s3457_s11 }
 0x4db   :  { %v297_v41 = vpop.permute.xlu0 %296 }
 0x4dc   :  { %v299_v42 = vadd.f32 %v297_v41, %v289_v40 }
 0x4de   :  { %3191 = vtanh.f32 %v299_v42 }
 0x4e8   :  { %v3192_v43 = vpop.eup %3191 }
 0x4e9   :  { %302 = vrot.lane.b32.xlu1 %v3192_v43, %s3456_s3 }
 0x55b   :  { %v303_v44 = vpop.permute.xlu1 %302 }
 0x55c   :  { %v305_v45 = vmul.f32 %v3190_v37, %v303_v44 }
 0x55e   :  { %309 = vrot.lane.b32.xlu0 %v305_v45, %s3457_s11 }
 0x5d0   :  { %v3646_v46 = vpop.permute.xlu0 %309 }
 0x5d1   :  { %2674 = vmatmul.mubr.msk.f32.vlgmr.msra.gmra.mrb[2].mxu0 %vm101_vm1, %v3646_v46 }
 0x5d2   :  { %2997 = vmatpush3.bf16.msra.mxu0 %v3605_v5  ;;  %2695 = vmatprep.mubr.msk.f32.mxu0 %vm3454_vm0, %v3455_v1 }
 0x5d3   :  { %2998 = vmatprep.subr.bf16.mxu0 %v3453_v0 }
 0x5d6   :  { %3000 = vmatpush3.bf16.msra.mxu0 %v3611_v7 }
 0x5d7   :  { %3007 = vmatprep.subr.bf16.mxu0 %v3453_v0 }
 0x6a4   :  { %v379_v48 = vpop.f32.mrb[2].mxu0 }
 0x6a5   :  { %v383_v49 = vadd.f32 %v379_v48, %v307_v47  ;;  %v2675_v50 = vpop.f32.mrb[3].mxu0 }
 0x6a7   :  { %3193 = vtanh.f32 %v383_v49  ;;  %v2454_v52 = vmul.f32 -1.442695, %v383_v49 }
 0x6a9   :  { %3195 = vpow2.f32 %v2454_v52 }
 0x6b1   :  { %v3194_v51 = vpop.eup %3193 }
 0x6b2   :  { %393 = vrot.lane.b32.xlu1 %v3194_v51, %s3456_s3 }
 0x6b3   :  { %v3196_v53 = vpop.eup %3195 }
 0x6b4   :  { %v387_v54 = vadd.f32 1.0, %v3196_v53 }
 0x6b6   :  { %3197 = vrcp.f32 %v387_v54 }
 0x6c0   :  { %v3198_v55 = vpop.eup %3197 }
 0x6c1   :  { %v391_v58 = vmul.f32 %v3198_v55, %v299_v42  ;;  %v613_v42 = vld [vmem:[#allocation2 + $0x28] sm:$0xff] }
 0x724   :  { %v394_v56 = vpop.permute.xlu1 %393 }
 0x725   :  { %v396_v57 = vmul.f32 %v3198_v55, %v394_v56  ;;  %v938_v56 = vld [vmem:[#allocation5 + $0x8] sm:$0xff] }
 0x727   :  { %398 = vrot.lane.b32.xlu0 %v396_v57, %s3457_s11 }
 0x799   :  { %v399_v59 = vpop.permute.xlu0 %398 }
 0x79a   :  { %v401_v60 = vadd.f32 %v399_v59, %v391_v58  ;;  %v928_v59 = vld [vmem:[#allocation8] sm:$0xff] }
 0x79c   :  { %3199 = vtanh.f32 %v401_v60 }
 0x7a6   :  { %v3200_v61 = vpop.eup %3199 }
 0x7a7   :  { %404 = vrot.lane.b32.xlu1 %v3200_v61, %s3456_s3 }
 0x819   :  { %v405_v62 = vpop.permute.xlu1 %404 }
 0x81a   :  { %v407_v63 = vmul.f32 %v3198_v55, %v405_v62  ;;  %v930_v62 = vld [vmem:[#allocation8 + $0x10] sm:$0xff] }
 0x81c   :  { %411 = vrot.lane.b32.xlu0 %v407_v63, %s3457_s11  ;;  %v931_v63 = vld [vmem:[#allocation8 + $0x18] sm:$0xff] }
 0x88e   :  { %v3660_v2 = vpop.permute.xlu0 %411 }
 0x88f   :  { %2685 = vmatmul.mubr.msk.f32.vlgmr.msra.gmra.mrb[2].mxu1 %vm101_vm1, %v3660_v2 }
 0x890   :  { %3003 = vmatpush3.bf16.msra.mxu1 %v3605_v5  ;;  %2706 = vmatprep.mubr.msk.f32.mxu1 %vm3454_vm0, %v3455_v1 }
 0x891   :  { %3004 = vmatprep.subr.bf16.mxu1 %v3453_v0 }
 0x894   :  { %3006 = vmatpush3.bf16.msra.mxu1 %v3611_v7 }
 0x895   :  { %3013 = vmatprep.subr.bf16.mxu1 %v3453_v0 }
 0x962   :  { %v481_v4 = vpop.f32.mrb[2].mxu1 }
 0x963   :  { %v485_v6 = vadd.f32 %v481_v4, %v409_v3  ;;  %v2686_v8 = vpop.f32.mrb[3].mxu1  ;;  %v3713_v4 = vpack.c.bf16 %v931_v63, %v930_v62 }
 0x964   :  { %v933_v8 = vld [vmem:[#allocation8 + $0x28] sm:$0xff] }
 0x965   :  { %3201 = vtanh.f32 %v485_v6  ;;  %v2456_v10 = vmul.f32 -1.442695, %v485_v6  ;;  %v932_v6 = vld [vmem:[#allocation8 + $0x20] sm:$0xff] }
 0x967   :  { %3203 = vpow2.f32 %v2456_v10  ;;  %v934_v10 = vld [vmem:[#allocation8 + $0x30] sm:$0xff] }
 0x96f   :  { %v3202_v9 = vpop.eup %3201 }
 0x970   :  { %495 = vrot.lane.b32.xlu1 %v3202_v9, %s3456_s3  ;;  %v3719_v9 = vpack.c.bf16 %v933_v8, %v932_v6 }
 0x971   :  { %v3204_v11 = vpop.eup %3203 }
 0x972   :  { %v489_v12 = vadd.f32 1.0, %v3204_v11  ;;  %v935_v11 = vld [vmem:[#allocation8 + $0x38] sm:$0xff] }
 0x974   :  { %3205 = vrcp.f32 %v489_v12  ;;  %v3723_v12 = vpack.c.bf16 %v935_v11, %v934_v10 }
 0x97e   :  { %v3206_v13 = vpop.eup %3205 }
 0x97f   :  { %v493_v16 = vmul.f32 %v3206_v13, %v401_v60  ;;  %v929_v60 = vld [vmem:[#allocation8 + $0x8] sm:$0xff] }
 0x980   :  { %v3706_v61 = vpack.c.bf16 %v929_v60, %v928_v59 }
 0x9e2   :  { %v496_v14 = vpop.permute.xlu1 %495 }
 0x9e3   :  { %v498_v15 = vmul.f32 %v3206_v13, %v496_v14 }
 0x9e5   :  { %500 = vrot.lane.b32.xlu0 %v498_v15, %s3457_s11 }
 0xa57   :  { %v501_v17 = vpop.permute.xlu0 %500 }
 0xa58   :  { %v503_v18 = vadd.f32 %v501_v17, %v493_v16 }
 0xa5a   :  { %3207 = vtanh.f32 %v503_v18 }
 0xa64   :  { %v3208_v19 = vpop.eup %3207 }
 0xa65   :  { %506 = vrot.lane.b32.xlu1 %v3208_v19, %s3456_s3  ;;  %v3745_v19 = vld [vmem:[%s4084_s5] ss:$0 sm:$0xff] }
 0xad7   :  { %v507_v20 = vpop.permute.xlu1 %506 }
 0xad8   :  { %v509_v21 = vmul.f32 %v3206_v13, %v507_v20 }
 0xada   :  { %513 = vrot.lane.b32.xlu0 %v509_v21, %s3457_s11 }
 0xb4c   :  { %v3674_v22 = vpop.permute.xlu0 %513 }
 0xb4d   :  { %2696 = vmatmul.mubr.msk.f32.vlgmr.msra.gmra.mrb[4].mxu0 %vm101_vm1, %v3674_v22 }
 0xb4e   :  { %3009 = vmatpush3.bf16.msra.mxu0 %v3605_v5  ;;  %2717 = vmatprep.mubr.msk.f32.mxu0 %vm3454_vm0, %v3455_v1 }
 0xb4f   :  { %3010 = vmatprep.subr.bf16.mxu0 %v3453_v0 }
 0xb52   :  { %3012 = vmatpush3.bf16.msra.mxu0 %v3611_v7 }
 0xb53   :  { %3019 = vmatprep.subr.bf16.mxu0 %v3453_v0 }
 0xc20   :  { %v583_v24 = vpop.f32.mrb[4].mxu0 }
 0xc21   :  { %v587_v25 = vadd.f32 %v583_v24, %v511_v23  ;;  %v2697_v26 = vpop.f32.mrb[5].mxu0 }
 0xc23   :  { %3209 = vtanh.f32 %v587_v25  ;;  %v2458_v29 = vmul.f32 -1.442695, %v587_v25  ;;  %v940_v25 = vld [vmem:[#allocation7 + $0x8] sm:$0xff] }
 0xc25   :  { %3211 = vpow2.f32 %v2458_v29 }
 0xc2d   :  { %v3210_v27 = vpop.eup %3209 }
 0xc2e   :  { %597 = vrot.lane.b32.xlu1 %v3210_v27, %s3456_s3 }
 0xc2f   :  { %v3212_v30 = vpop.eup %3211 }
 0xc30   :  { %v591_v31 = vadd.f32 1.0, %v3212_v30 }
 0xc32   :  { %3213 = vrcp.f32 %v591_v31 }
 0xc3c   :  { %v3214_v32 = vpop.eup %3213 }
 0xc3d   :  { %v595_v35 = vmul.f32 %v3214_v32, %v503_v18 }
 0xca0   :  { %v598_v33 = vpop.permute.xlu1 %597 }
 0xca1   :  { %v600_v34 = vmul.f32 %v3214_v32, %v598_v33 }
 0xca3   :  { %602 = vrot.lane.b32.xlu0 %v600_v34, %s3457_s11 }
 0xd15   :  { %v603_v36 = vpop.permute.xlu0 %602 }
 0xd16   :  { %v605_v37 = vadd.f32 %v603_v36, %v595_v35 }
 0xd18   :  { %3215 = vtanh.f32 %v605_v37 }
 0xd22   :  { %v3216_v38 = vpop.eup %3215 }
 0xd23   :  { %608 = vrot.lane.b32.xlu1 %v3216_v38, %s3456_s3 }
 0xd95   :  { %v609_v39 = vpop.permute.xlu1 %608 }
 0xd96   :  { %v611_v40 = vmul.f32 %v3214_v32, %v609_v39 }
 0xd98   :  { %615 = vrot.lane.b32.xlu0 %v611_v40, %s3457_s11 }
 0xe0a   :  { %v3688_v41 = vpop.permute.xlu0 %615 }
 0xe0b   :  { %2707 = vmatmul.mubr.msk.f32.vlgmr.msra.gmra.mrb[4].mxu1 %vm101_vm1, %v3688_v41 }
 0xe0c   :  { %3015 = vmatpush3.bf16.msra.mxu1 %v3605_v5  ;;  %2728 = vmatprep.mubr.msk.f32.mxu1 %vm3454_vm0, %v3455_v1 }
 0xe0d   :  { %3016 = vmatprep.subr.bf16.mxu1 %v3453_v0 }
 0xe10   :  { %3018 = vmatpush3.bf16.msra.mxu1 %v3611_v7 }
 0xe11   :  { %3031 = vmatprep.subr.bf16.mxu1 %v3453_v0 }
 0xede   :  { %v685_v43 = vpop.f32.mrb[4].mxu1 }
 0xedf   :  { %v689_v44 = vadd.f32 %v685_v43, %v613_v42  ;;  %v2708_v45 = vpop.f32.mrb[5].mxu1 }
 0xee1   :  { %3217 = vtanh.f32 %v689_v44  ;;  %v2460_v48 = vmul.f32 -1.442695, %v689_v44 }
 0xee3   :  { %3219 = vpow2.f32 %v2460_v48 }
 0xeeb   :  { %v3218_v47 = vpop.eup %3217 }
 0xeec   :  { %699 = vrot.lane.b32.xlu1 %v3218_v47, %s3456_s3 }
 0xeed   :  { %v3220_v5 = vpop.eup %3219 }
 0xeee   :  { %v693_v49 = vadd.f32 1.0, %v3220_v5 }
 0xef0   :  { %3221 = vrcp.f32 %v693_v49 }
 0xefa   :  { %v3222_v50 = vpop.eup %3221 }
 0xefb   :  { %v697_v7 = vmul.f32 %v3222_v50, %v605_v37 }
 0xf5e   :  { %v700_v51 = vpop.permute.xlu1 %699 }
 0xf5f   :  { %v702_v52 = vmul.f32 %v3222_v50, %v700_v51 }
 0xf61   :  { %704 = vrot.lane.b32.xlu0 %v702_v52, %s3457_s11 }
 0xfd3   :  { %v705_v53 = vpop.permute.xlu0 %704 }
 0xfd4   :  { %v3700_v54 = vadd.f32 %v705_v53, %v697_v7 }
 0xfd6   :  { %3223 = vtanh.f32 %v3700_v54 }
 0xfe0   :  { %v3224_v55 = vpop.eup %3223 }
 0xfe1   :  { %710 = vrot.lane.b32.xlu1 %v3224_v55, %s3456_s3 }
 0xfe5   :  { %943 = vrot.lane.b32.xlu1 %v938_v56, %s3457_s11 }
0x1053   :  { %v711_v57 = vpop.permute.xlu1 %710 }
0x1054   :  { %v713_v58 = vmul.f32 %v3222_v50, %v711_v57 }
0x1056   :  { %717 = vrot.lane.b32.xlu0 %v713_v58, %s3457_s11 }
0x1057   :  { %v944_v13 = vpop.permute.xlu1 %943 }
0x1058   :  { %v946_v14 = vsel %vm101_vm1, %v3632_v28, %v944_v13  ;;  %v715_v28 = vld [vmem:[#allocation2 + $0x30] sm:$0xff] }
0x10c8   :  { %v3708_v3 = vpop.permute.xlu0 %717 }
0x10c9   :  { %2718 = vmatmul.mubr.msk.f32.vlgmr.msra.gmra.mrb[6].mxu0 %vm101_vm1, %v3708_v3 }
0x10ca   :  { %3021 = vmatpush3.bf16.msra.mxu0 %v3706_v61  ;;  %2747 = vmatprep.mubr.msk.f32.mxu0 %vm3454_vm0, %v3455_v1 }
0x10cb   :  { %3022 = vmatprep.subr.bf16.mxu0 %v3453_v0 }
0x10ce   :  { %3024 = vmatpush3.bf16.msra.mxu0 %v3713_v4 }
0x10cf   :  { %3025 = vmatprep.subr.bf16.mxu0 %v3453_v0 }
0x10d2   :  { %3027 = vmatpush3.bf16.msra.mxu0 %v3719_v9 }
0x10d3   :  { %3028 = vmatprep.subr.bf16.mxu0 %v3453_v0 }
0x10d6   :  { %3030 = vmatpush3.bf16.msra.mxu0 %v3723_v12 }
0x10d7   :  { %3043 = vmatprep.subr.bf16.mxu0 %v3453_v0 }
0x10d9   :  { %2748 = vmatmul.mubr.msk.f32.vlgmr.msra.gmra.mrb[8].mxu0 %vm953_vm2, %v946_v14 }
0x10da   :  { %3045 = vmatpush3.bf16.msra.mxu0 %v3706_v61  ;;  %2785 = vmatprep.mubr.msk.f32.mxu0 %vm3454_vm0, %v3455_v1 }
0x10db   :  { %3046 = vmatprep.subr.bf16.mxu0 %v3453_v0 }
0x10de   :  { %3048 = vmatpush3.bf16.msra.mxu0 %v3713_v4 }
0x10df   :  { %3049 = vmatprep.subr.bf16.mxu0 %v3453_v0 }
0x10e2   :  { %3051 = vmatpush3.bf16.msra.mxu0 %v3719_v9 }
0x10e3   :  { %3052 = vmatprep.subr.bf16.mxu0 %v3453_v0 }
0x10e6   :  { %3054 = vmatpush3.bf16.msra.mxu0 %v3723_v12 }
0x10e7   :  { %3067 = vmatprep.subr.bf16.mxu0 %v3453_v0 }
0x119c   :  { %v787_v15 = vpop.f32.mrb[6].mxu0 }
0x119d   :  { %v791_v16 = vadd.f32 %v787_v15, %v715_v28  ;;  %v2719_v17 = vpop.f32.mrb[7].mxu0 }
0x119f   :  { %3225 = vtanh.f32 %v791_v16  ;;  %v2462_v26 = vmul.f32 -1.442695, %v791_v16 }
0x11a9   :  { %v3226_v18 = vpop.eup %3225 }
0x11aa   :  { %801 = vrot.lane.b32.xlu0 %v3226_v18, %s3456_s3 }
0x11ac   :  { %v1023_v20 = vpop.f32.mrb[8].mxu0 }
0x11ad   :  { %v1024_v21 = vadd.f32 %v3745_v19, %v1023_v20  ;;  %v2749_v23 = vpop.f32.mrb[9].mxu0 }
0x11af   :  { %3227 = vtanh.f32 %v1024_v21  ;;  %v2467_v29 = vmul.f32 -1.442695, %v1024_v21 }
0x11b0   :  { %3229 = vpow2.f32 %v2462_v26 }
0x11b1   :  { %3231 = vpow2.f32 %v2467_v29 }
0x11b9   :  { %v3228_v24 = vpop.eup %3227 }
0x11ba   :  { %1040 = vrot.lane.b32.xlu1 %v3228_v24, %s3456_s3  ;;  %v3230_v27 = vpop.eup %3229 }
0x11bb   :  { %v795_v30 = vadd.f32 1.0, %v3230_v27  ;;  %v3232_v31 = vpop.eup %3231 }
0x11bc   :  { %v1030_v35 = vadd.f32 1.0, %v3232_v31 }
0x11bd   :  { %3233 = vrcp.f32 %v795_v30 }
0x11be   :  { %1035 = vrot.lane.b32.xlu1 %v940_v25, %s3457_s11  ;;  %3235 = vrcp.f32 %v1030_v35 }
0x11c7   :  { %v3234_v32 = vpop.eup %3233 }
0x11c8   :  { %v3236_v36 = vpop.eup %3235  ;;  %v799_v39 = vmul.f32 %v3234_v32, %v3700_v54 }
0x121c   :  { %v802_v33 = vpop.permute.xlu0 %801 }
0x121d   :  { %v804_v34 = vmul.f32 %v3234_v32, %v802_v33 }
0x121f   :  { %806 = vrot.lane.b32.xlu0 %v804_v34, %s3457_s11 }
0x122c   :  { %v1041_v37 = vpop.permute.xlu1 %1040 }
0x122d   :  { %v1043_v38 = vmul.f32 %v3236_v36, %v1041_v37 }
0x122f   :  { %1045 = vrot.lane.b32.xlu0 %v1043_v38, %s3457_s11 }
0x1230   :  { %v1036_v43 = vpop.permute.xlu1 %1035 }
0x1231   :  { %v1038_v45 = vmul.f32 %v3236_v36, %v1036_v43 }
0x1291   :  { %v807_v40 = vpop.permute.xlu0 %806 }
0x1292   :  { %v3753_v42 = vadd.f32 %v807_v40, %v799_v39 }
0x1294   :  { %3237 = vtanh.f32 %v3753_v42 }
0x129e   :  { %v3238_v44 = vpop.eup %3237 }
0x129f   :  { %812 = vrot.lane.b32.xlu1 %v3238_v44, %s3456_s3 }
0x12a1   :  { %v1046_v47 = vpop.permute.xlu0 %1045 }
0x12a2   :  { %v1048_v48 = vadd.f32 %v1046_v47, %v1038_v45 }
0x12a4   :  { %3239 = vtanh.f32 %v1048_v48 }
0x12ae   :  { %v3240_v5 = vpop.eup %3239 }
0x12af   :  { %1051 = vrot.lane.b32.xlu0 %v3240_v5, %s3456_s3 }
0x1311   :  { %v813_v49 = vpop.permute.xlu1 %812 }
0x1312   :  { %v815_v50 = vmul.f32 %v3234_v32, %v813_v49 }
0x1314   :  { %819 = vrot.lane.b32.xlu1 %v815_v50, %s3457_s11 }
0x1321   :  { %v1052_v51 = vpop.permute.xlu0 %1051 }
0x1322   :  { %v3759_v52 = vmul.f32 %v3236_v36, %v1052_v51 }
0x1324   :  { %1057 = vrot.lane.b32.xlu0 %v3759_v52, %s3456_s3 }
0x1386   :  { %v3763_v7 = vpop.permute.xlu1 %819 }
0x1387   :  { %2729 = vmatmul.mubr.msk.f32.vlgmr.msra.gmra.mrb[6].mxu1 %vm101_vm1, %v3763_v7 }
0x1388   :  { %3033 = vmatpush3.bf16.msra.mxu1 %v3706_v61  ;;  %2766 = vmatprep.mubr.msk.f32.mxu1 %vm3454_vm0, %v3455_v1 }
0x1389   :  { %3034 = vmatprep.subr.bf16.mxu1 %v3453_v0 }
0x138c   :  { %3036 = vmatpush3.bf16.msra.mxu1 %v3713_v4 }
0x138d   :  { %3037 = vmatprep.subr.bf16.mxu1 %v3453_v0 }
0x1390   :  { %3039 = vmatpush3.bf16.msra.mxu1 %v3719_v9 }
0x1391   :  { %3040 = vmatprep.subr.bf16.mxu1 %v3453_v0 }
0x1394   :  { %3042 = vmatpush3.bf16.msra.mxu1 %v3723_v12 }
0x1395   :  { %3055 = vmatprep.subr.bf16.mxu1 %v3453_v0 }
0x1396   :  { %v1058_v53 = vpop.permute.xlu0 %1057 }
0x1397   :  { %v1060_v54 = vsel %vm101_vm1, %v3646_v46, %v1058_v53 }
0x1398   :  { %2767 = vmatmul.mubr.msk.f32.vlgmr.msra.gmra.mrb[8].mxu1 %vm953_vm2, %v1060_v54 }
0x1399   :  { %3057 = vmatpush3.bf16.msra.mxu1 %v3706_v61  ;;  %2804 = vmatprep.mubr.msk.f32.mxu1 %vm3454_vm0, %v3455_v1 }
0x139a   :  { %3058 = vmatprep.subr.bf16.mxu1 %v3453_v0 }
0x139d   :  { %3060 = vmatpush3.bf16.msra.mxu1 %v3713_v4 }
0x139e   :  { %3061 = vmatprep.subr.bf16.mxu1 %v3453_v0 }
0x13a1   :  { %3063 = vmatpush3.bf16.msra.mxu1 %v3719_v9 }
0x13a2   :  { %3064 = vmatprep.subr.bf16.mxu1 %v3453_v0 }
0x13a5   :  { %3066 = vmatpush3.bf16.msra.mxu1 %v3723_v12 }
0x13a6   :  { %3079 = vmatprep.subr.bf16.mxu1 %v3453_v0 }
0x145a   :  { %v3790_v46 = vpop.f32.mrb[6].mxu1 }
0x145b   :  { %v2730_v55 = vpop.f32.mrb[7].mxu1 }
0x146b   :  { %v1130_v56 = vpop.f32.mrb[8].mxu1 }
0x146c   :  { %v1131_v57 = vadd.f32 %v3745_v19, %v1130_v56  ;;  %v2768_v58 = vpop.f32.mrb[9].mxu1 }
0x146e   :  { %3241 = vtanh.f32 %v1131_v57  ;;  %v2469_v60 = vmul.f32 -1.442695, %v1131_v57 }
0x1470   :  { %3243 = vpow2.f32 %v2469_v60 }
0x1478   :  { %v3242_v59 = vpop.eup %3241 }
0x1479   :  { %1143 = vrot.lane.b32.xlu1 %v3242_v59, %s3456_s3 }
0x147a   :  { %v3244_v62 = vpop.eup %3243 }
0x147b   :  { %v1137_v63 = vadd.f32 1.0, %v3244_v62 }
0x147d   :  { %3245 = vrcp.f32 %v1137_v63 }
0x1487   :  { %v3246_v6 = vpop.eup %3245 }
0x1488   :  { %v1141_v11 = vmul.f32 %v3246_v6, %v1048_v48 }
0x14eb   :  { %v1144_v8 = vpop.permute.xlu1 %1143 }
0x14ec   :  { %v1146_v10 = vmul.f32 %v3246_v6, %v1144_v8 }
0x14ee   :  { %1148 = vrot.lane.b32.xlu0 %v1146_v10, %s3457_s11 }
0x1560   :  { %v1149_v13 = vpop.permute.xlu0 %1148 }
0x1561   :  { %v1151_v14 = vadd.f32 %v1149_v13, %v1141_v11 }
0x1563   :  { %3247 = vtanh.f32 %v1151_v14 }
0x156d   :  { %v3248_v28 = vpop.eup %3247 }
0x156e   :  { %1154 = vrot.lane.b32.xlu1 %v3248_v28, %s3456_s3 }
0x15e0   :  { %v1155_v15 = vpop.permute.xlu1 %1154 }
0x15e1   :  { %v3796_v16 = vmul.f32 %v3246_v6, %v1155_v15 }
0x15e3   :  { %1160 = vrot.lane.b32.xlu0 %v3796_v16, %s3456_s3 }
0x1655   :  { %v1161_v17 = vpop.permute.xlu0 %1160 }
0x1656   :  { %v1163_v18 = vsel %vm101_vm1, %v3660_v2, %v1161_v17 }
0x1657   :  { %2786 = vmatmul.mubr.msk.f32.vlgmr.msra.gmra.mrb[10].mxu0 %vm953_vm2, %v1163_v18 }
0x1658   :  { %3069 = vmatpush3.bf16.msra.mxu0 %v3706_v61  ;;  %2823 = vmatprep.mubr.msk.f32.mxu0 %vm3454_vm0, %v3455_v1 }
0x1659   :  { %3070 = vmatprep.subr.bf16.mxu0 %v3453_v0 }
0x165c   :  { %3072 = vmatpush3.bf16.msra.mxu0 %v3713_v4 }
0x165d   :  { %3073 = vmatprep.subr.bf16.mxu0 %v3453_v0 }
0x1660   :  { %3075 = vmatpush3.bf16.msra.mxu0 %v3719_v9 }
0x1661   :  { %3076 = vmatprep.subr.bf16.mxu0 %v3453_v0 }
0x1664   :  { %3078 = vmatpush3.bf16.msra.mxu0 %v3723_v12 }
0x1665   :  { %3091 = vmatprep.subr.bf16.mxu0 %v3453_v0 }
0x172a   :  { %v1233_v2 = vpop.f32.mrb[10].mxu0 }
0x172b   :  { %v1234_v20 = vadd.f32 %v3745_v19, %v1233_v2  ;;  %v2787_v21 = vpop.f32.mrb[11].mxu0 }
0x172d   :  { %3249 = vtanh.f32 %v1234_v20  ;;  %v2471_v24 = vmul.f32 -1.442695, %v1234_v20 }
0x172f   :  { %3251 = vpow2.f32 %v2471_v24 }
0x1737   :  { %v3250_v23 = vpop.eup %3249 }
0x1738   :  { %1246 = vrot.lane.b32.xlu1 %v3250_v23, %s3456_s3 }
0x1739   :  { %v3252_v25 = vpop.eup %3251 }
0x173a   :  { %v1240_v26 = vadd.f32 1.0, %v3252_v25 }
0x173c   :  { %3253 = vrcp.f32 %v1240_v26 }
0x1746   :  { %v3254_v27 = vpop.eup %3253 }
0x1747   :  { %v1244_v31 = vmul.f32 %v3254_v27, %v1151_v14 }
0x17aa   :  { %v1247_v29 = vpop.permute.xlu1 %1246 }
0x17ab   :  { %v1249_v30 = vmul.f32 %v3254_v27, %v1247_v29 }
0x17ad   :  { %1251 = vrot.lane.b32.xlu0 %v1249_v30, %s3457_s11  ;;  %v817_v30 = vld [vmem:[#allocation2 + $0x38] sm:$0xff] }
0x181f   :  { %v1252_v32 = vpop.permute.xlu0 %1251 }
0x1820   :  { %v1254_v33 = vadd.f32 %v1252_v32, %v1244_v31 }
0x1822   :  { %3255 = vtanh.f32 %v1254_v33 }
0x182c   :  { %v3256_v34 = vpop.eup %3255 }
0x182d   :  { %1257 = vrot.lane.b32.xlu1 %v3256_v34, %s3456_s3 }
0x189f   :  { %v1258_v35 = vpop.permute.xlu1 %1257 }
0x18a0   :  { %v3817_v36 = vmul.f32 %v3254_v27, %v1258_v35 }
0x18a2   :  { %1263 = vrot.lane.b32.xlu0 %v3817_v36, %s3456_s3 }
0x1914   :  { %v1264_v37 = vpop.permute.xlu0 %1263 }
0x1915   :  { %v1266_v38 = vsel %vm101_vm1, %v3674_v22, %v1264_v37 }
0x1916   :  { %2805 = vmatmul.mubr.msk.f32.vlgmr.msra.gmra.mrb[10].mxu1 %vm953_vm2, %v1266_v38 }
0x1917   :  { %3081 = vmatpush3.bf16.msra.mxu1 %v3706_v61  ;;  %2842 = vmatprep.mubr.msk.f32.mxu1 %vm3454_vm0, %v3455_v1 }
0x1918   :  { %3082 = vmatprep.subr.bf16.mxu1 %v3453_v0 }
0x191b   :  { %3084 = vmatpush3.bf16.msra.mxu1 %v3713_v4 }
0x191c   :  { %3085 = vmatprep.subr.bf16.mxu1 %v3453_v0 }
0x191f   :  { %3087 = vmatpush3.bf16.msra.mxu1 %v3719_v9 }
0x1920   :  { %3088 = vmatprep.subr.bf16.mxu1 %v3453_v0 }
0x1923   :  { %3090 = vmatpush3.bf16.msra.mxu1 %v3723_v12 }
0x1924   :  { %3103 = vmatprep.subr.bf16.mxu1 %v3453_v0 }
0x19e9   :  { %v1336_v22 = vpop.f32.mrb[10].mxu1 }
0x19ea   :  { %v1337_v39 = vadd.f32 %v3745_v19, %v1336_v22  ;;  %v2806_v40 = vpop.f32.mrb[11].mxu1 }
0x19ec   :  { %3257 = vtanh.f32 %v1337_v39  ;;  %v2473_v44 = vmul.f32 -1.442695, %v1337_v39 }
0x19ee   :  { %3259 = vpow2.f32 %v2473_v44 }
0x19f6   :  { %v3258_v43 = vpop.eup %3257 }
0x19f7   :  { %1349 = vrot.lane.b32.xlu1 %v3258_v43, %s3456_s3 }
0x19f8   :  { %v3260_v45 = vpop.eup %3259 }
0x19f9   :  { %v1343_v47 = vadd.f32 1.0, %v3260_v45 }
0x19fb   :  { %3261 = vrcp.f32 %v1343_v47 }
0x1a05   :  { %v3262_v48 = vpop.eup %3261 }
0x1a06   :  { %v1347_v50 = vmul.f32 %v3262_v48, %v1254_v33  ;;  %v893_v33 = vadd.f32 %v3790_v46, %v817_v30  ;;  %v1787_v30 = vmax.f32 %v3759_v52, 0.0 }
0x1a08   :  { %v2464_v37 = vmul.f32 -1.442695, %v893_v33 }
0x1a69   :  { %v1350_v5 = vpop.permute.xlu1 %1349 }
0x1a6a   :  { %v1352_v49 = vmul.f32 %v3262_v48, %v1350_v5 }
0x1a6c   :  { %1354 = vrot.lane.b32.xlu0 %v1352_v49, %s3457_s11 }
0x1ade   :  { %v1355_v51 = vpop.permute.xlu0 %1354 }
0x1adf   :  { %v1357_v53 = vadd.f32 %v1355_v51, %v1347_v50 }
0x1ae1   :  { %3263 = vtanh.f32 %v1357_v53 }
0x1aeb   :  { %v3264_v54 = vpop.eup %3263 }
0x1aec   :  { %1360 = vrot.lane.b32.xlu1 %v3264_v54, %s3456_s3 }
0x1b5e   :  { %v1361_v55 = vpop.permute.xlu1 %1360 }
0x1b5f   :  { %v3838_v56 = vmul.f32 %v3262_v48, %v1361_v55 }
0x1b61   :  { %1366 = vrot.lane.b32.xlu0 %v3838_v56, %s3456_s3 }
0x1bd3   :  { %v1367_v57 = vpop.permute.xlu0 %1366 }
0x1bd4   :  { %v1369_v58 = vsel %vm101_vm1, %v3688_v41, %v1367_v57 }
0x1bd5   :  { %2824 = vmatmul.mubr.msk.f32.vlgmr.msra.gmra.mrb[12].mxu0 %vm953_vm2, %v1369_v58 }
0x1bd6   :  { %3093 = vmatpush3.bf16.msra.mxu0 %v3706_v61  ;;  %2861 = vmatprep.mubr.msk.f32.mxu0 %vm3454_vm0, %v3455_v1 }
0x1bd7   :  { %3094 = vmatprep.subr.bf16.mxu0 %v3453_v0 }
0x1bda   :  { %3096 = vmatpush3.bf16.msra.mxu0 %v3713_v4 }
0x1bdb   :  { %3097 = vmatprep.subr.bf16.mxu0 %v3453_v0 }
0x1bde   :  { %3099 = vmatpush3.bf16.msra.mxu0 %v3719_v9 }
0x1bdf   :  { %3100 = vmatprep.subr.bf16.mxu0 %v3453_v0 }
0x1be2   :  { %3102 = vmatpush3.bf16.msra.mxu0 %v3723_v12 }
0x1be3   :  { %3115 = vmatprep.subr.bf16.mxu0 %v3453_v0 }
0x1ca8   :  { %v1439_v41 = vpop.f32.mrb[12].mxu0 }
0x1ca9   :  { %v1440_v59 = vadd.f32 %v3745_v19, %v1439_v41  ;;  %v2825_v60 = vpop.f32.mrb[13].mxu0 }
0x1cab   :  { %3265 = vtanh.f32 %v1440_v59  ;;  %v2475_v63 = vmul.f32 -1.442695, %v1440_v59 }
0x1cad   :  { %3267 = vpow2.f32 %v2475_v63 }
0x1cb5   :  { %v3266_v62 = vpop.eup %3265 }
0x1cb6   :  { %1452 = vrot.lane.b32.xlu1 %v3266_v62, %s3456_s3 }
0x1cb7   :  { %v3268_v6 = vpop.eup %3267 }
0x1cb8   :  { %v1446_v8 = vadd.f32 1.0, %v3268_v6 }
0x1cba   :  { %3269 = vrcp.f32 %v1446_v8 }
0x1cc4   :  { %v3270_v10 = vpop.eup %3269 }
0x1cc5   :  { %v1450_v14 = vmul.f32 %v3270_v10, %v1357_v53 }
0x1d28   :  { %v1453_v11 = vpop.permute.xlu1 %1452 }
0x1d29   :  { %v1455_v13 = vmul.f32 %v3270_v10, %v1453_v11 }
0x1d2b   :  { %1457 = vrot.lane.b32.xlu0 %v1455_v13, %s3457_s11 }
0x1d9d   :  { %v1458_v28 = vpop.permute.xlu0 %1457 }
0x1d9e   :  { %v1460_v15 = vadd.f32 %v1458_v28, %v1450_v14 }
0x1da0   :  { %3271 = vtanh.f32 %v1460_v15 }
0x1daa   :  { %v3272_v17 = vpop.eup %3271 }
0x1dab   :  { %1463 = vrot.lane.b32.xlu1 %v3272_v17, %s3456_s3 }
0x1e1d   :  { %v1464_v18 = vpop.permute.xlu1 %1463 }
0x1e1e   :  { %v3859_v2 = vmul.f32 %v3270_v10, %v1464_v18 }
0x1e20   :  { %1469 = vrot.lane.b32.xlu0 %v3859_v2, %s3456_s3 }
0x1e92   :  { %v1470_v20 = vpop.permute.xlu0 %1469 }
0x1e93   :  { %v1472_v21 = vsel %vm101_vm1, %v3708_v3, %v1470_v20 }
0x1e94   :  { %2843 = vmatmul.mubr.msk.f32.vlgmr.msra.gmra.mrb[12].mxu1 %vm953_vm2, %v1472_v21 }
0x1e95   :  { %3105 = vmatpush3.bf16.msra.mxu1 %v3706_v61  ;;  %2880 = vmatprep.mubr.msk.f32.mxu1 %vm3454_vm0, %v3455_v1 }
0x1e96   :  { %3106 = vmatprep.subr.bf16.mxu1 %v3453_v0 }
0x1e99   :  { %3108 = vmatpush3.bf16.msra.mxu1 %v3713_v4 }
0x1e9a   :  { %3109 = vmatprep.subr.bf16.mxu1 %v3453_v0 }
0x1e9d   :  { %3111 = vmatpush3.bf16.msra.mxu1 %v3719_v9 }
0x1e9e   :  { %3112 = vmatprep.subr.bf16.mxu1 %v3453_v0 }
0x1ea1   :  { %3114 = vmatpush3.bf16.msra.mxu1 %v3723_v12 }
0x1ea2   :  { %3121 = vmatprep.subr.bf16.mxu1 %v3453_v0 }
0x1f67   :  { %v1542_v3 = vpop.f32.mrb[12].mxu1 }
0x1f68   :  { %v1543_v61 = vadd.f32 %v3745_v19, %v1542_v3  ;;  %v2844_v23 = vpop.f32.mrb[13].mxu1  ;;  %v93_v3 = vld [vmem:[%s4085_s6] sm:$0xff] }
0x1f6a   :  { %3273 = vtanh.f32 %v1543_v61  ;;  %v2477_v25 = vmul.f32 -1.442695, %v1543_v61  ;;  %v94_v61 = vld [vmem:[%s4085_s6 + $0x8] sm:$0xff] }
0x1f6b   :  { %v3916_v23 = vpack.c.bf16 %v94_v61, %v93_v3 }
0x1f6c   :  { %3275 = vpow2.f32 %v2477_v25 }
0x1f74   :  { %v3274_v24 = vpop.eup %3273 }
0x1f75   :  { %1555 = vrot.lane.b32.xlu1 %v3274_v24, %s3456_s3 }
0x1f76   :  { %v3276_v4 = vpop.eup %3275 }
0x1f77   :  { %v1549_v26 = vadd.f32 1.0, %v3276_v4  ;;  %v95_v4 = vld [vmem:[%s4085_s6 + $0x10] sm:$0xff] }
0x1f79   :  { %3277 = vrcp.f32 %v1549_v26  ;;  %v96_v26 = vld [vmem:[%s4085_s6 + $0x18] sm:$0xff]  ;;  %s3458_s6 = smov 96  }
0x1f83   :  { %v3278_v9 = vpop.eup %3277 }
0x1f84   :  { %v1553_v12 = vmul.f32 %v3278_v9, %v1460_v15 }
0x1fe7   :  { %v1556_v27 = vpop.permute.xlu1 %1555 }
0x1fe8   :  { %v1558_v29 = vmul.f32 %v3278_v9, %v1556_v27 }
0x1fea   :  { %1560 = vrot.lane.b32.xlu0 %v1558_v29, %s3457_s11 }
0x205c   :  { %v1561_v31 = vpop.permute.xlu0 %1560 }
0x205d   :  { %v1563_v32 = vadd.f32 %v1561_v31, %v1553_v12  ;;  %v1948_v31 = vmax.f32 %v3817_v36, 0.0 }
0x205f   :  { %3279 = vtanh.f32 %v1563_v32 }
0x2060   :  { %3281 = vtanh.f32 %v893_v33 }
0x2061   :  { %3283 = vpow2.f32 %v2464_v37 }
0x2069   :  { %v3280_v34 = vpop.eup %3279 }
0x206a   :  { %1566 = vrot.lane.b32.xlu1 %v3280_v34, %s3456_s3  ;;  %v3282_v35 = vpop.eup %3281 }
0x206b   :  { %v3284_v38 = vpop.eup %3283 }
0x206c   :  { %v897_v22 = vadd.f32 1.0, %v3284_v38 }
0x206e   :  { %903 = vrot.lane.b32.xlu1 %v3282_v35, %s3456_s3  ;;  %3285 = vrcp.f32 %v897_v22  ;;  %v1871_v22 = vmax.f32 %v3796_v16, 0.0 }
0x2078   :  { %v3286_v46 = vpop.eup %3285 }
0x2079   :  { %v901_v48 = vmul.f32 %v3286_v46, %v3753_v42 }
0x20dc   :  { %v1567_v39 = vpop.permute.xlu1 %1566 }
0x20dd   :  { %v3882_v40 = vmul.f32 %v3278_v9, %v1567_v39  ;;  %v3928_v9 = vpack.c.bf16 %v96_v26, %v95_v4 }
0x20df   :  { %1572 = vrot.lane.b32.xlu0 %v3882_v40, %s3456_s3  ;;  %v2179_v16 = vmax.f32 %v3882_v40, 0.0 }
0x20e0   :  { %v904_v43 = vpop.permute.xlu1 %903 }
0x20e1   :  { %v906_v44 = vmul.f32 %v3286_v46, %v904_v43 }
0x20e3   :  { %908 = vrot.lane.b32.xlu1 %v906_v44, %s3457_s11 }
0x2151   :  { %v1573_v45 = vpop.permute.xlu0 %1572 }
0x2152   :  { %v1575_v47 = vsel %vm101_vm1, %v3763_v7, %v1573_v45 }
0x2153   :  { %2862 = vmatmul.mubr.msk.f32.vlgmr.msra.gmra.mrb[14].mxu0 %vm953_vm2, %v1575_v47 }
0x2154   :  { %2891 = vmatprep.mubr.msk.f32.mxu0 %vm3454_vm0, %v3455_v1  ;;  %3117 = vmatpush3.bf16.msra.mxu0 %v3916_v23 }
0x2155   :  { %v909_v5 = vpop.permute.xlu1 %908  ;;  %3118 = vmatprep.subr.bf16.mxu0 %v3453_v0 }
0x2156   :  { %v3893_v49 = vadd.f32 %v909_v5, %v901_v48 }
0x2158   :  { %3287 = vtanh.f32 %v3893_v49  ;;  %3120 = vmatpush3.bf16.msra.mxu0 %v3928_v9 }
0x2159   :  { %3127 = vmatprep.subr.bf16.mxu0 %v3453_v0 }
0x2162   :  { %v3288_v50 = vpop.eup %3287 }
0x2163   :  { %914 = vrot.lane.b32.xlu1 %v3288_v50, %s3456_s3 }
0x21d5   :  { %v915_v51 = vpop.permute.xlu1 %914 }
0x21d6   :  { %v917_v53 = vmul.f32 %v3286_v46, %v915_v51  ;;  %v2025_v46 = vmax.f32 %v3838_v56, 0.0 }
0x21d8   :  { %919 = vrot.lane.b32.xlu1 %v917_v53, %s3457_s11 }
0x2226   :  { %v1645_v7 = vpop.f32.mrb[14].mxu0 }
0x2227   :  { %v1646_v54 = vadd.f32 %v3745_v19, %v1645_v7  ;;  %v2863_v55 = vpop.f32.mrb[15].mxu0 }
0x2229   :  { %3289 = vtanh.f32 %v1646_v54  ;;  %v2479_v58 = vmul.f32 -1.442695, %v1646_v54 }
0x222b   :  { %3291 = vpow2.f32 %v2479_v58 }
0x2233   :  { %v3290_v42 = vpop.eup %3289 }
0x2234   :  { %1658 = vrot.lane.b32.xlu0 %v3290_v42, %s3456_s3 }
0x2235   :  { %v3292_v41 = vpop.eup %3291 }
0x2236   :  { %v1652_v59 = vadd.f32 1.0, %v3292_v41 }
0x2238   :  { %3293 = vrcp.f32 %v1652_v59 }
0x2242   :  { %v3294_v60 = vpop.eup %3293 }
0x2243   :  { %v1656_v6 = vmul.f32 %v3294_v60, %v1563_v32  ;;  %v2102_v32 = vmax.f32 %v3859_v2, 0.0 }
0x224a   :  { %v920_v57 = vpop.permute.xlu1 %919 }
0x224b   :  { %922 = vst.msk [vmem:[#allocation10] sm:$0xff] %vm101_vm1, %v920_v57 }
0x22a6   :  { %v1659_v62 = vpop.permute.xlu0 %1658 }
0x22a7   :  { %v1661_v63 = vmul.f32 %v3294_v60, %v1659_v62 }
0x22a9   :  { %1663 = vrot.lane.b32.xlu0 %v1661_v63, %s3457_s11 }
0x231b   :  { %v1664_v8 = vpop.permute.xlu0 %1663 }
0x231c   :  { %v1666_v10 = vadd.f32 %v1664_v8, %v1656_v6 }
0x231e   :  { %3295 = vtanh.f32 %v1666_v10 }
0x2328   :  { %v3296_v11 = vpop.eup %3295 }
0x2329   :  { %1669 = vrot.lane.b32.xlu0 %v3296_v11, %s3456_s3 }
0x239b   :  { %v1670_v13 = vpop.permute.xlu0 %1669 }
0x239c   :  { %v1672_v14 = vmul.f32 %v3294_v60, %v1670_v13 }
0x239e   :  { %1674 = vrot.lane.b32.xlu0 %v1672_v14, %s3456_s3  ;;  %v2256_v33 = vmax.f32 %v1672_v14, 0.0 }
0x2410   :  { %v1675_v28 = vpop.permute.xlu0 %1674 }
0x2411   :  { %v1677_v15 = vsel %vm101_vm1, %v920_v57, %v1675_v28 }
0x2412   :  { %2881 = vmatmul.mubr.msk.f32.vlgmr.msra.gmra.mrb[14].mxu1 %vm953_vm2, %v1677_v15 }
0x2413   :  { %2902 = vmatprep.mubr.msk.f32.mxu1 %vm3454_vm0, %v3455_v1  ;;  %3123 = vmatpush3.bf16.msra.mxu1 %v3916_v23 }
0x2414   :  { %3124 = vmatprep.subr.bf16.mxu1 %v3453_v0 }
0x2417   :  { %3126 = vmatpush3.bf16.msra.mxu1 %v3928_v9 }
0x2418   :  { %3133 = vmatprep.subr.bf16.mxu1 %v3453_v0 }
0x24e5   :  { %v1747_v17 = vpop.f32.mrb[14].mxu1 }
0x24e6   :  { %v1748_v18 = vadd.f32 %v3745_v19, %v1747_v17  ;;  %v2882_v20 = vpop.f32.mrb[15].mxu1 }
0x24e8   :  { %3297 = vtanh.f32 %v1748_v18  ;;  %v2481_v19 = vmul.f32 -1.442695, %v1748_v18 }
0x24ea   :  { %3299 = vpow2.f32 %v2481_v19 }
0x24f2   :  { %v3298_v21 = vpop.eup %3297 }
0x24f3   :  { %1760 = vrot.lane.b32.xlu1 %v3298_v21, %s3456_s3 }
0x24f4   :  { %v3300_v24 = vpop.eup %3299 }
0x24f5   :  { %v1754_v25 = vadd.f32 1.0, %v3300_v24 }
0x24f7   :  { %3301 = vrcp.f32 %v1754_v25 }
0x2501   :  { %v3302_v27 = vpop.eup %3301 }
0x2502   :  { %v1758_v34 = vmul.f32 %v3302_v27, %v1666_v10 }
0x2565   :  { %v1761_v29 = vpop.permute.xlu1 %1760 }
0x2566   :  { %v1763_v12 = vmul.f32 %v3302_v27, %v1761_v29 }
0x2568   :  { %1765 = vrot.lane.b32.xlu0 %v1763_v12, %s3457_s11 }
0x256c   :  { %1795 = vrot.lane.b32.xlu0 %v1787_v30, %s3457_s11 }
0x2570   :  { %1950 = vrot.lane.b32.xlu0 %v1948_v31, %s3457_s11 }
0x2574   :  { %2104 = vrot.lane.b32.xlu0 %v2102_v32, %s3457_s11 }
0x2578   :  { %2258 = vrot.lane.b32.xlu0 %v2256_v33, %s3457_s11 }
0x257c   :  { %924 = vrot.lane.b32.xlu0 %v3893_v49, %s3458_s6  ;;  %v3998_v49 = vld [vmem:[%s4086_s7] ss:$0 sm:$0xff] }
0x25da   :  { %v1766_v35 = vpop.permute.xlu0 %1765 }
0x25db   :  { %v1768_v37 = vadd.f32 %v1766_v35, %v1758_v34 }
0x25dd   :  { %3303 = vtanh.f32 %v1768_v37  ;;  %1782 = vrot.lane.b32.xlu0 %v1768_v37, %s3458_s6 }
0x25de   :  { %v1796_v52 = vpop.permute.xlu0 %1795 }
0x25df   :  { %2892 = vmatmul.mubr.msk.f32.vlgmr.msra.gmra.mrb[16].mxu0 %vm101_vm1, %v1796_v52 }
0x25e0   :  { %3129 = vmatpush3.bf16.msra.mxu0 %v3916_v23  ;;  %2913 = vmatprep.mubr.msk.f32.mxu0 %vm3454_vm0, %v3455_v1 }
0x25e1   :  { %3130 = vmatprep.subr.bf16.mxu0 %v3453_v0 }
0x25e2   :  { %v1951_v36 = vpop.permute.xlu0 %1950 }
0x25e4   :  { %3132 = vmatpush3.bf16.msra.mxu0 %v3928_v9 }
0x25e5   :  { %3139 = vmatprep.subr.bf16.mxu0 %v3453_v0 }
0x25e6   :  { %v2105_v2 = vpop.permute.xlu0 %2104 }
0x25e7   :  { %v3304_v38 = vpop.eup %3303  ;;  %2914 = vmatmul.mubr.msk.f32.vlgmr.msra.gmra.mrb[18].mxu0 %vm101_vm1, %v1951_v36 }
0x25e8   :  { %3141 = vmatpush3.bf16.msra.mxu0 %v3916_v23  ;;  %1771 = vrot.lane.b32.xlu1 %v3304_v38, %s3456_s3  ;;  %s2429_s3 = sshll.u32 %s3460_s30, 4  ;;  %s4022_s3 = int_to_ptr.vmem [resolvable:$true] %s2429_s3 }
0x25e9   :  { %3142 = vmatprep.subr.bf16.mxu0 %v3453_v0  ;;  %2935 = vmatprep.mubr.msk.f32.mxu0 %vm3454_vm0, %v3455_v1 }
0x25ea   :  { %v2259_v39 = vpop.permute.xlu0 %2258 }
0x25ec   :  { %3144 = vmatpush3.bf16.msra.mxu0 %v3928_v9  ;;  %1873 = vrot.lane.b32.xlu1 %v1871_v22, %s3457_s11 }
0x25ed   :  { %3151 = vmatprep.subr.bf16.mxu0 %v3453_v0 }
0x25ee   :  { %v925_v43 = vpop.permute.xlu0 %924 }
0x25ef   :  { %2936 = vmatmul.mubr.msk.f32.vlgmr.msra.gmra.mrb[20].mxu0 %vm101_vm1, %v2105_v2  ;;  %927 = vst.msk [vmem:[#allocation11] sm:$0xff] %vm101_vm1, %v925_v43 }
0x25f0   :  { %3153 = vmatpush3.bf16.msra.mxu0 %v3916_v23  ;;  %2027 = vrot.lane.b32.xlu1 %v2025_v46, %s3457_s11 }
0x25f1   :  { %3154 = vmatprep.subr.bf16.mxu0 %v3453_v0  ;;  %2957 = vmatprep.mubr.msk.f32.mxu0 %vm3454_vm0, %v3455_v1 }
0x25f4   :  { %3156 = vmatpush3.bf16.msra.mxu0 %v3928_v9  ;;  %2181 = vrot.lane.b32.xlu1 %v2179_v16, %s3457_s11 }
0x25f7   :  { %2958 = vmatmul.mubr.msk.f32.vlgmr.msra.gmra.mrb[22].mxu0 %vm101_vm1, %v2259_v39 }
0x264f   :  { %v1783_v56 = vpop.permute.xlu0 %1782 }
0x2650   :  { %1786 = vst.msk [vmem:[#allocation11 + $0x8] sm:$0xff] %vm101_vm1, %v1783_v56 }
0x265a   :  { %v1772_v44 = vpop.permute.xlu1 %1771 }
0x265b   :  { %v1774_v45 = vmul.f32 %v3302_v27, %v1772_v44 }
0x265d   :  { %v2333_v47 = vmax.f32 %v1774_v45, 0.0 }
0x265e   :  { %v1874_v48 = vpop.permute.xlu1 %1873 }
0x265f   :  { %2335 = vrot.lane.b32.xlu1 %v2333_v47, %s3457_s11  ;;  %2903 = vmatmul.mubr.msk.f32.vlgmr.msra.gmra.mrb[16].mxu1 %vm101_vm1, %v1874_v48 }
0x2660   :  { %3135 = vmatpush3.bf16.msra.mxu1 %v3916_v23  ;;  %2924 = vmatprep.mubr.msk.f32.mxu1 %vm3454_vm0, %v3455_v1 }
0x2661   :  { %3136 = vmatprep.subr.bf16.mxu1 %v3453_v0 }
0x2662   :  { %v2028_v40 = vpop.permute.xlu1 %2027 }
0x2663   :  { %1776 = vrot.lane.b32.xlu1 %v1774_v45, %s3457_s11  ;;  %s3393_s11 = scalar_lea.vmem %s2418_s29, 256 }
0x2664   :  { %3138 = vmatpush3.bf16.msra.mxu1 %v3928_v9  ;;  %p3394_p4 = scmp.ne.s32.totalorder %s2418_s29, %s3393_s11  ;;  %p3399_p6 = scmp.lt.s32.totalorder %s3393_s11, %s3393_s11 }
0x2665   :  { %3145 = vmatprep.subr.bf16.mxu1 %v3453_v0 }
0x2666   :  { %v2182_v5 = vpop.permute.xlu1 %2181  ;;  %p3400_p7 = por %p3399_p6, %p3398_p5 }
0x2667   :  { %2925 = vmatmul.mubr.msk.f32.vlgmr.msra.gmra.mrb[18].mxu1 %vm101_vm1, %v2028_v40 }
0x2668   :  { %3147 = vmatpush3.bf16.msra.mxu1 %v3916_v23  ;;  %2946 = vmatprep.mubr.msk.f32.mxu1 %vm3454_vm0, %v3455_v1  ;;  %p3401_p8 = pnand %p3400_p7, %p3394_p4 }
0x2669   :  { %3148 = vmatprep.subr.bf16.mxu1 %v3453_v0 }
0x266c   :  { %3150 = vmatpush3.bf16.msra.mxu1 %v3928_v9 }
0x266d   :  { %3157 = vmatprep.subr.bf16.mxu1 %v3453_v0 }
0x266f   :  { %2947 = vmatmul.mubr.msk.f32.vlgmr.msra.gmra.mrb[20].mxu1 %vm101_vm1, %v2182_v5 }
0x2670   :  { %3159 = vmatpush3.bf16.msra.mxu1 %v3916_v23  ;;  %2968 = vmatprep.mubr.msk.f32.mxu1 %vm3454_vm0, %v3455_v1 }
0x2671   :  { %3160 = vmatprep.subr.bf16.mxu1 %v3453_v0 }
0x2674   :  { %3162 = vmatpush3.bf16.msra.mxu1 %v3928_v9 }
0x26b2   :  { %v1865_v50 = vpop.f32.mrb[16].mxu0 }
0x26b3   :  { %v1866_v51 = vadd.f32 %v3998_v49, %v1865_v50  ;;  %v2893_v53 = vpop.f32.mrb[17].mxu0 }
0x26b5   :  { %1870 = vst.msk [vmem:[%s4087_s8] sm:$0xff] %vm1869_vm3, %v1866_v51 }
0x26ba   :  { %v2020_v1 = vpop.f32.mrb[18].mxu0 }
0x26bb   :  { %v2021_v0 = vadd.f32 %v3998_v49, %v2020_v1  ;;  %v2915_v7 = vpop.f32.mrb[19].mxu0 }
0x26bd   :  { %2024 = vst.msk [vmem:[%s4087_s8 + $0x10] sm:$0xff] %vm1869_vm3, %v2021_v0 }
0x26c2   :  { %v2174_v54 = vpop.f32.mrb[20].mxu0 }
0x26c3   :  { %v2175_v55 = vadd.f32 %v3998_v49, %v2174_v54  ;;  %v2937_v42 = vpop.f32.mrb[21].mxu0 }
0x26c5   :  { %2178 = vst.msk [vmem:[%s4087_s8 + $0x20] sm:$0xff] %vm1869_vm3, %v2175_v55 }
0x26ca   :  { %v2328_v57 = vpop.f32.mrb[22].mxu0 }
0x26cb   :  { %v2329_v58 = vadd.f32 %v3998_v49, %v2328_v57  ;;  %v2959_v41 = vpop.f32.mrb[23].mxu0 }
0x26cd   :  { %2332 = vst.msk [vmem:[%s4087_s8 + $0x30] sm:$0xff] %vm1869_vm3, %v2329_v58 }
0x26d1   :  { %v2336_v59 = vpop.permute.xlu1 %2335 }
0x26d2   :  { %2969 = vmatmul.mubr.msk.f32.vlgmr.msra.gmra.mrb[22].mxu1 %vm101_vm1, %v2336_v59 }
0x26d5   :  { %v1777_v60 = vpop.permute.xlu1 %1776 }
0x26d6   :  { %1780 = vst.msk [vmem:[#allocation10 + $0x8] sm:$0xff] %vm101_vm1, %v1777_v60 }
0x26d7   :  { %3404 = shalt.err (!%p3401_p8)
}
0x26d8   :  { %s3405_s5 = scalar_lea.hbm %s4088_s9, 256 }
0x26d9   :  { %p3406_p9 = scmp.ne.s32.totalorder %s4088_s9, %s3405_s5  ;;  %p3409_p10 = scmp.lt.u32.totalorder %s3405_s5, %s4088_s9 }
0x26db   :  { %p3411_p11 = pnand %p3409_p10, %p3406_p9 }
0x26dd   :  { %3414 = shalt.err (!%p3411_p11)
}
0x26de   :  { %2423 = dma.vmem_to_hbm [thread:$0]  %s2418_s29, 256, %s4088_s9, [#allocation4], %s3449_s25, %s3449_s25, %s3450_s26  }
0x26df   :  { %s3415_s14 = scalar_lea.vmem %s4022_s3, 256  ;;  %p3420_p13 = scmp.lt.s32.totalorder %s4022_s3, %s4022_s3 }
0x26e0   :  { %p3416_p12 = scmp.ne.s32.totalorder %s4022_s3, %s3415_s14  ;;  %p3421_p0 = scmp.lt.s32.totalorder %s3415_s14, %s3415_s14 }
0x26e2   :  { %p3422_p1 = por %p3421_p0, %p3420_p13 }
0x26e4   :  { %p3423_p2 = pnand %p3422_p1, %p3416_p12 }
0x26e6   :  { %3426 = shalt.err (!%p3423_p2)
}
0x26e7   :  { %s3427_s21 = scalar_lea.hbm %s4089_s10, 256 }
0x26e8   :  { %p3428_p3 = scmp.ne.s32.totalorder %s4089_s10, %s3427_s21  ;;  %p3431_p4 = scmp.lt.u32.totalorder %s3427_s21, %s4089_s10 }
0x26ea   :  { %p3433_p5 = pnand %p3431_p4, %p3428_p3 }
0x26ec   :  { %3436 = shalt.err (!%p3433_p5)
}
0x26ed   :  { %2435 = dma.vmem_to_hbm [thread:$0]  %s4022_s3, 256, %s4089_s10, [#allocation12], %s3449_s25, %s3449_s25, %s3450_s26  }
0x2732   :  { %v1943_v62 = vpop.f32.mrb[16].mxu1 }
0x2733   :  { %v1944_v63 = vadd.f32 %v3998_v49, %v1943_v62  ;;  %v2904_v6 = vpop.f32.mrb[17].mxu1 }
0x2735   :  { %1947 = vst.msk [vmem:[%s4087_s8 + $0x8] sm:$0xff] %vm1869_vm3, %v1944_v63 }
0x273a   :  { %v2097_v8 = vpop.f32.mrb[18].mxu1 }
0x273b   :  { %v2098_v10 = vadd.f32 %v3998_v49, %v2097_v8  ;;  %v2926_v11 = vpop.f32.mrb[19].mxu1 }
0x273d   :  { %2101 = vst.msk [vmem:[%s4087_s8 + $0x18] sm:$0xff] %vm1869_vm3, %v2098_v10 }
0x2742   :  { %v2251_v13 = vpop.f32.mrb[20].mxu1 }
0x2743   :  { %v2252_v14 = vadd.f32 %v3998_v49, %v2251_v13  ;;  %v2948_v28 = vpop.f32.mrb[21].mxu1 }
0x2745   :  { %2255 = vst.msk [vmem:[%s4087_s8 + $0x28] sm:$0xff] %vm1869_vm3, %v2252_v14 }
0x27a5   :  { %v2405_v15 = vpop.f32.mrb[22].mxu1 }
0x27a6   :  { %v2406_v17 = vadd.f32 %v3998_v49, %v2405_v15  ;;  %v2970_v18 = vpop.f32.mrb[23].mxu1 }
0x27a8   :  { %2409 = vst.msk [vmem:[%s4087_s8 + $0x38] sm:$0xff] %vm1869_vm3, %v2406_v17 }
0x27a9   :  { %3443 = dma.done.wait [#allocation4], 256  }
0x27aa   :  { %3444 = vsyncadd [#allocation4], 4294967040 }
0x27ab   :  { %3445 = dma.done.wait [#allocation12], 256  }
0x27ac   :  { %3446 = vsyncadd [#allocation12], 4294967040 }
0x27ad   :  { %2444 = vsyncpa [#allocation3], 1 }
0x27ae   :  { %2445 = vsyncpa [#allocation6], 1 }
0x27af   :  { %2446 = vsyncpa [#allocation9], 1 }
0x27b0   :  { %2447 = vsyncpa [#allocation4], 1 }
0x27b1   :  { %2448 = vsyncpa [#allocation12], 1 }

</bundles_post_ra>
